<compile_context>
chip_gen: v7x
topology: tpu7x:2x2x1
jax: 0.10.0
libtpu: 0.0.40
codegen_flags: <defaults>
</compile_context>

<pallas_src>
import jax
import jax.numpy as jnp
from jax.experimental import pallas as pl
from jax.experimental.pallas import tpu as pltpu

K = 5                      # conv kernel size (kernel_dim)
NEG_SLOPE = 0.2            # leaky_relu negative slope used by ICNN


# ----------------------------------------------------------------------------
# Pallas kernels
# ----------------------------------------------------------------------------
def _matmul_kernel(a_ref, b_ref, o_ref):
    # bf16 x bf16 -> f32 accumulate (single-pass MXU)
    o_ref[...] = jnp.dot(a_ref[...], b_ref[...], preferred_element_type=jnp.float32)


def _matmul_bias_kernel(a_ref, b_ref, bias_ref, o_ref):
    o_ref[...] = (jnp.dot(a_ref[...], b_ref[...], preferred_element_type=jnp.float32)
                  + bias_ref[...])


def _matmul_icnn_fwd_kernel(a_ref, b_ref, quad_ref, lin_ref, z_ref):
    # z = leaky_relu(wz(z_prev) + quad^2 + lin)  -- elementwise fused as epilogue
    wz = jnp.dot(a_ref[...], b_ref[...], preferred_element_type=jnp.float32)
    q = quad_ref[...]
    pre = wz + q * q + lin_ref[...]
    z_ref[...] = jnp.where(pre > 0, pre, NEG_SLOPE * pre)


def _layer0_fwd_kernel(quad_ref, lin_ref, z_ref):
    # layer 0 has no wz term
    q = quad_ref[...]
    pre = q * q + lin_ref[...]
    z_ref[...] = jnp.where(pre > 0, pre, NEG_SLOPE * pre)


def _bwd_elem_kernel(dz_ref, z_ref, quad_ref, g_ref):
    # mask recomputed from sign(z) (leaky_relu is sign preserving); output is
    # [dquad ; dpre] stacked so one im2col feeds all adjoint convs of the layer.
    nf = dz_ref.shape[0]
    dpre = dz_ref[...] * jnp.where(z_ref[...] > 0, 1.0, NEG_SLOPE)
    g_ref[:nf, :] = 2.0 * quad_ref[...] * dpre
    g_ref[nf:, :] = dpre


# ----------------------------------------------------------------------------
# Pallas wrappers (column-tiled, lane-dense, parallel grid axis)
# ----------------------------------------------------------------------------
def _col_tile(n):
    # full block for small / awkward n; otherwise a large multiple of 128 that
    # keeps double-buffered tiles far below the v7x 64 MiB VMEM.
    if n % 128 != 0 or n <= 2048:
        return n
    for t in (2048, 1024, 512, 256, 128):
        if n % t == 0:
            return t
    return n


def _parallel_cols():
    return pltpu.CompilerParams(dimension_semantics=("parallel",))


def pallas_matmul(a, b):
    cout, ckk = a.shape
    n = b.shape[1]
    tn = _col_tile(n)
    return pl.pallas_call(
        _matmul_kernel,
        out_shape=jax.ShapeDtypeStruct((cout, n), jnp.float32),
        grid=(n // tn,),
        in_specs=[pl.BlockSpec((cout, ckk), lambda j: (0, 0)),
                  pl.BlockSpec((ckk, tn), lambda j: (0, j))],
        out_specs=pl.BlockSpec((cout, tn), lambda j: (0, j)),
        compiler_params=_parallel_cols(),
    )(a, b)


def pallas_matmul_bias(a, b, bias):
    cout, ckk = a.shape
    n = b.shape[1]
    tn = _col_tile(n)
    return pl.pallas_call(
        _matmul_bias_kernel,
        out_shape=jax.ShapeDtypeStruct((cout, n), jnp.float32),
        grid=(n // tn,),
        in_specs=[pl.BlockSpec((cout, ckk), lambda j: (0, 0)),
                  pl.BlockSpec((ckk, tn), lambda j: (0, j)),
                  pl.BlockSpec((cout, 1), lambda j: (0, 0))],
        out_specs=pl.BlockSpec((cout, tn), lambda j: (0, j)),
        compiler_params=_parallel_cols(),
    )(a, b, bias)


def pallas_conv_icnn_fwd(a, b, quad, lin):
    cout, ckk = a.shape
    n = b.shape[1]
    tn = _col_tile(n)
    return pl.pallas_call(
        _matmul_icnn_fwd_kernel,
        out_shape=jax.ShapeDtypeStruct((cout, n), jnp.float32),
        grid=(n // tn,),
        in_specs=[pl.BlockSpec((cout, ckk), lambda j: (0, 0)),
                  pl.BlockSpec((ckk, tn), lambda j: (0, j)),
                  pl.BlockSpec((cout, tn), lambda j: (0, j)),
                  pl.BlockSpec((cout, tn), lambda j: (0, j))],
        out_specs=pl.BlockSpec((cout, tn), lambda j: (0, j)),
        compiler_params=_parallel_cols(),
    )(a, b, quad, lin)


def pallas_layer0_fwd(quad, lin):
    nf, n = quad.shape
    tn = _col_tile(n)
    return pl.pallas_call(
        _layer0_fwd_kernel,
        out_shape=jax.ShapeDtypeStruct((nf, n), jnp.float32),
        grid=(n // tn,),
        in_specs=[pl.BlockSpec((nf, tn), lambda j: (0, j)),
                  pl.BlockSpec((nf, tn), lambda j: (0, j))],
        out_specs=pl.BlockSpec((nf, tn), lambda j: (0, j)),
        compiler_params=_parallel_cols(),
    )(quad, lin)


def pallas_bwd_elem(dz, z, quad):
    nf, n = dz.shape
    tn = _col_tile(n)
    return pl.pallas_call(
        _bwd_elem_kernel,
        out_shape=jax.ShapeDtypeStruct((2 * nf, n), jnp.float32),
        grid=(n // tn,),
        in_specs=[pl.BlockSpec((nf, tn), lambda j: (0, j)),
                  pl.BlockSpec((nf, tn), lambda j: (0, j)),
                  pl.BlockSpec((nf, tn), lambda j: (0, j))],
        out_specs=pl.BlockSpec((2 * nf, tn), lambda j: (0, j)),
        compiler_params=_parallel_cols(),
    )(dz, z, quad)


# ----------------------------------------------------------------------------
# Circular-conv glue (im2col + weight reshapes, all cheap XLA ops)
# ----------------------------------------------------------------------------
def im2col_circular(x4):
    # x4: [C, B, H, W] -> bf16 [K*K*C, B*H*W]; rows ordered (kh, kw, c).
    c, b, h, w = x4.shape
    pad = (K - 1) // 2
    x4 = x4.astype(jnp.bfloat16)                       # halve im2col HBM bytes
    xp = jnp.pad(x4, ((0, 0), (0, 0), (pad, pad), (pad, pad)), mode="wrap")
    patches = [xp[:, :, kh:kh + h, kw:kw + w] for kh in range(K) for kw in range(K)]
    return jnp.stack(patches, axis=0).reshape(K * K * c, b * h * w)


def w_to_2d(w):
    # [Cout, Cin, K, K] -> [Cout, K*K*Cin], columns ordered (kh, kw, cin).
    return jnp.transpose(w, (0, 2, 3, 1)).reshape(w.shape[0], -1)


def adjoint4d(w):
    # Adjoint of circular cross-correlation: flip spatially, swap in/out channels.
    return jnp.transpose(w[:, :, ::-1, ::-1], (1, 0, 2, 3))


# ----------------------------------------------------------------------------
# ICNN forward:  (1 - sc) * d/dx[sum scalar(x)] + sc * x
# ----------------------------------------------------------------------------
def icnn_forward(p, x_nchw):
    bsz, cin, h, wd = x_nchw.shape
    n = bsz * h * wd
    nl = len(p["wz"])
    nf = p["wq"][0].shape[0]
    sc = p["sc"]

    x = jnp.transpose(x_nchw, (1, 0, 2, 3)).astype(jnp.float32)      # [Cin, B, H, W]

    # ---- forward: ALL wx_quad / wx_lin convs share one im2col of x and run as
    #      a single fused Pallas matmul (one launch instead of 2*(nl+1)).
    px = im2col_circular(x)                                          # [KK*Cin, n]
    a_x = jnp.concatenate([w_to_2d(p["wq"][i]) for i in range(nl + 1)]
                          + [w_to_2d(p["wl_w"][i]) for i in range(nl + 1)],
                          axis=0).astype(jnp.bfloat16)
    bias = jnp.concatenate([jnp.zeros(((nl + 1) * nf,), jnp.float32)]
                           + [p["wl_b"][i].astype(jnp.float32)
                              for i in range(nl + 1)]).reshape(-1, 1)
    ql = pallas_matmul_bias(a_x, px, bias)                           # [2(nl+1)nf, n]
    quads = [ql[i * nf:(i + 1) * nf] for i in range(nl + 1)]
    off = (nl + 1) * nf
    lins = [ql[off + i * nf: off + (i + 1) * nf] for i in range(nl + 1)]

    # layer 0 (no wz term, no zeros tensor)
    zs = [pallas_layer0_fwd(quads[0], lins[0])]
    for i in range(1, nl + 1):
        pz = im2col_circular(zs[-1].reshape(nf, bsz, h, wd))         # [KK*nf, n]
        a_wz = w_to_2d(p["wz"][i - 1]).astype(jnp.bfloat16)
        zs.append(pallas_conv_icnn_fwd(a_wz, pz, quads[i], lins[i]))  # fused epilogue

    # ---- backward (== autograd.grad of the scalar wrt x)
    # avg_pool cotangent is spatially constant, so the wf-adjoint conv is just a
    # per-channel weight sum -- no conv needed.
    dz = jnp.broadcast_to(
        (jnp.sum(p["wf"], axis=(0, 2, 3)) / (h * wd))[:, None], (nf, n))
    # sc*x folded into accumulator init; (1-sc) folded into adjoint weights.
    dx = sc * x.reshape(cin, n)
    for i in range(nl, -1, -1):
        g = pallas_bwd_elem(dz, zs[i], quads[i])                     # [2nf, n] = [dquad; dpre]
        pg = im2col_circular(g.reshape(2 * nf, bsz, h, wd))          # [KK*2nf, n]
        a_dx = (1.0 - sc) * jnp.concatenate(
            [adjoint4d(p["wq"][i]), adjoint4d(p["wl_w"][i])], axis=1)   # [Cin, 2nf, K, K]
        if i > 0:
            wz_a = adjoint4d(p["wz"][i - 1])                            # [nf, nf, K, K]
            a_dz = jnp.concatenate([jnp.zeros_like(wz_a), wz_a], axis=1)
            a_full = jnp.concatenate([a_dx, a_dz], axis=0)              # [Cin+nf, 2nf, K, K]
        else:
            a_full = a_dx
        out = pallas_matmul(w_to_2d(a_full).astype(jnp.bfloat16), pg)   # one adjoint conv
        dx = dx + out[:cin]
        if i > 0:
            dz = out[cin:]

    return jnp.transpose(dx.reshape(cin, bsz, h, wd), (1, 0, 2, 3))     # back to NCHW


def icnn_couple_forward(fwd_params, bwd_params, stepsize, x_nchw, grad_fun):
    # fwd_model(x) depends only on x -> loop-invariant; computed once.
    fx = icnn_forward(fwd_params, x_nchw)
    fwd = x_nchw
    for i in range(int(stepsize.shape[0])):
        # stays in XLA so it fuses into the next icnn_forward's im2col/pad
        inner = fx - stepsize[i] * grad_fun(fwd)
        fwd = icnn_forward(bwd_params, inner)
    return fwd


# ----------------------------------------------------------------------------
# Pure-JAX reference (for verification)
# ----------------------------------------------------------------------------
def _ref_conv(x, w, b=None):
    pad = (K - 1) // 2
    xp = jnp.pad(x, ((0, 0), (0, 0), (pad, pad), (pad, pad)), mode="wrap")
    out = jax.lax.conv_general_dilated(
        xp, w, (1, 1), "VALID",
        dimension_numbers=("NCHW", "OIHW", "NCHW"),
        precision=jax.lax.Precision.HIGHEST)
    if b is not None:
        out = out + b.reshape(1, -1, 1, 1)
    return out


def _ref_icnn_scalar(p, x):
    lrelu = lambda v: jnp.where(v > 0, v, NEG_SLOPE * v)
    z = lrelu(_ref_conv(x, p["wq"][0]) ** 2 + _ref_conv(x, p["wl_w"][0], p["wl_b"][0]))
    for i in range(len(p["wz"])):
        z = lrelu(_ref_conv(z, p["wz"][i])
                  + _ref_conv(x, p["wq"][i + 1]) ** 2
                  + _ref_conv(x, p["wl_w"][i + 1], p["wl_b"][i + 1]))
    z = _ref_conv(z, p["wf"])
    return jnp.mean(z, axis=(2, 3))                      # [B, Cin]


def _ref_icnn_forward(p, x):
    g = jax.grad(lambda v: jnp.sum(_ref_icnn_scalar(p, v)))(x)
    return (1.0 - p["sc"]) * g + p["sc"] * x


def _ref_couple_forward(fwd_p, bwd_p, stepsize, x, grad_fun):
    fwd = x
    for i in range(int(stepsize.shape[0])):
        fwd = _ref_icnn_forward(bwd_p, _ref_icnn_forward(fwd_p, x)
                                - stepsize[i] * grad_fun(fwd))
    return fwd


# ----------------------------------------------------------------------------
# Deterministic parameter construction (synthetic; shapes follow ICNN.__init__)
# ----------------------------------------------------------------------------
def make_icnn_params(key, cin, nf, nl, sc):
    keys = iter(jax.random.split(key, 4 * nl + 6))
    p = {"sc": float(sc)}
    p["wz"] = [jax.random.uniform(next(keys), (nf, nf, K, K), jnp.float32, 0.0, 0.02)
               for _ in range(nl)]
    p["wq"] = [jax.random.uniform(next(keys), (nf, cin, K, K), jnp.float32, -0.1, 0.1)
               for _ in range(nl + 1)]
    p["wl_w"] = [jax.random.uniform(next(keys), (nf, cin, K, K), jnp.float32, -0.1, 0.1)
                 for _ in range(nl + 1)]
    p["wl_b"] = [jax.random.uniform(next(keys), (nf,), jnp.float32, -0.1, 0.1)
                 for _ in range(nl + 1)]
    p["wf"] = jax.random.uniform(next(keys), (cin, nf, K, K), jnp.float32, 0.0, 0.02)
    return p


# ----------------------------------------------------------------------------
if __name__ == "__main__":
    B, CIN, H, W = 2, 1, 16, 16          # x: NCHW
    NF, NL, NUM_ITERS = 8, 2, 3

    key = jax.random.PRNGKey(0)
    k_fwd, k_bwd, k_x, k_y = jax.random.split(key, 4)

    fwd_params = make_icnn_params(k_fwd, CIN, NF, NL, sc=0.5)
    bwd_params = make_icnn_params(k_bwd, CIN, NF, NL, sc=0.5)
    stepsize = 0.01 * jnp.ones((NUM_ITERS,), jnp.float32)   # ICNNCouple.stepsize

    x = jax.random.normal(k_x, (B, CIN, H, W), jnp.float32)
    y = jax.random.normal(k_y, (B, CIN, H, W), jnp.float32)

    # grad of 0.5 * ||v - y||^2
    couple = jax.jit(lambda fp, bp, ss, xx, yy:
                     icnn_couple_forward(fp, bp, ss, xx, lambda v: v - yy))
    out = jax.block_until_ready(couple(fwd_params, bwd_params, stepsize, x, y))

    ref = jax.block_until_ready(
        _ref_couple_forward(fwd_params, bwd_params, stepsize, x, lambda v: v - y))

    assert out.shape == x.shape and out.dtype == jnp.float32
    assert bool(jnp.all(jnp.isfinite(out)))
    assert bool(jnp.allclose(out, ref, rtol=3e-2, atol=3e-2)), (
        f"max abs err = {float(jnp.max(jnp.abs(out - ref)))}")

    print("KERNEL_OK")
</pallas_src>

<mosaic_0001>
module attributes {stable_mosaic.version = 11 : i64} {
  func.func @_layer0_fwd_kernel(%arg0: i32, %arg1: memref<8x512xf32, #tpu.memory_space<vmem>>, %arg2: memref<8x512xf32, #tpu.memory_space<vmem>>, %arg3: memref<8x512xf32, #tpu.memory_space<vmem>>) attributes {dimension_semantics = [#tpu.dimension_semantics<parallel>], iteration_bounds = array<i64: 1>, scalar_prefetch = 0 : i64, scratch_operands = 0 : i64, tpu.core_type = #tpu.core_type<tc>, window_params = [{transform_indices = @transform_0, window_bounds = array<i64: 8, 512>}, {transform_indices = @transform_1, window_bounds = array<i64: 8, 512>}, {transform_indices = @transform_2, window_bounds = array<i64: 8, 512>}]} {
    %c0 = arith.constant 0 : index
    %c0_0 = arith.constant 0 : index
    %0 = vector.load %arg1[%c0, %c0_0] : memref<8x512xf32, #tpu.memory_space<vmem>>, vector<8x512xf32>
    %1 = arith.mulf %0, %0 : vector<8x512xf32>
    %c0_1 = arith.constant 0 : index
    %c0_2 = arith.constant 0 : index
    %2 = vector.load %arg2[%c0_1, %c0_2] : memref<8x512xf32, #tpu.memory_space<vmem>>, vector<8x512xf32>
    %3 = arith.addf %1, %2 : vector<8x512xf32>
    %cst = arith.constant 0.000000e+00 : f32
    %4 = vector.broadcast %cst : f32 to vector<8x512xf32>
    %5 = arith.cmpf ogt, %3, %4 : vector<8x512xf32>
    %cst_3 = arith.constant 2.000000e-01 : f32
    %6 = vector.broadcast %cst_3 : f32 to vector<8x512xf32>
    %7 = arith.mulf %6, %3 : vector<8x512xf32>
    %8 = arith.select %5, %3, %7 : vector<8x512xi1>, vector<8x512xf32>
    %c0_4 = arith.constant 0 : index
    %c0_5 = arith.constant 0 : index
    %9 = vector.load %arg3[%c0_4, %c0_5] : memref<8x512xf32, #tpu.memory_space<vmem>>, vector<8x512xf32>
    tpu.vector_store %arg3[%c0_4, %c0_5], %8 {strides = array<i32>} : memref<8x512xf32, #tpu.memory_space<vmem>>, vector<8x512xf32>,
    return
  }
  func.func @transform_0(%arg0: i32) -> (i32, i32) {
    %c0_i32 = arith.constant 0 : i32
    %c0_i32_0 = arith.constant 0 : i32
    return %c0_i32, %arg0 : i32, i32
  }
  func.func @transform_1(%arg0: i32) -> (i32, i32) {
    %c0_i32 = arith.constant 0 : i32
    %c0_i32_0 = arith.constant 0 : i32
    return %c0_i32, %arg0 : i32, i32
  }
  func.func @transform_2(%arg0: i32) -> (i32, i32) {
    %c0_i32 = arith.constant 0 : i32
    %c0_i32_0 = arith.constant 0 : i32
    return %c0_i32, %arg0 : i32, i32
  }
}

module attributes {stable_mosaic.version = 11 : i64} {
  func.func @_matmul_bias_kernel(%arg0: i32, %arg1: memref<48x25xbf16, #tpu.memory_space<vmem>>, %arg2: memref<25x512xbf16, #tpu.memory_space<vmem>>, %arg3: memref<48x1xf32, #tpu.memory_space<vmem>>, %arg4: memref<48x512xf32, #tpu.memory_space<vmem>>) attributes {dimension_semantics = [#tpu.dimension_semantics<parallel>], iteration_bounds = array<i64: 1>, scalar_prefetch = 0 : i64, scratch_operands = 0 : i64, tpu.core_type = #tpu.core_type<tc>, window_params = [{pipeline_mode = #tpu.pipeline_mode<synchronous>, transform_indices = @transform_0, window_bounds = array<i64: 48, 25>}, {transform_indices = @transform_1, window_bounds = array<i64: 25, 512>}, {pipeline_mode = #tpu.pipeline_mode<synchronous>, transform_indices = @transform_2, window_bounds = array<i64: 48, 1>}, {transform_indices = @transform_3, window_bounds = array<i64: 48, 512>}]} {
    %c0 = arith.constant 0 : index
    %c0_0 = arith.constant 0 : index
    %0 = vector.load %arg1[%c0, %c0_0] : memref<48x25xbf16, #tpu.memory_space<vmem>>, vector<48x25xbf16>
    %c0_1 = arith.constant 0 : index
    %c0_2 = arith.constant 0 : index
    %1 = vector.load %arg2[%c0_1, %c0_2] : memref<25x512xbf16, #tpu.memory_space<vmem>>, vector<25x512xbf16>
    %cst = arith.constant dense<0.000000e+00> : vector<48x512xf32>
    %2 = tpu.matmul %0, %1, %cst {dimension_numbers = #tpu.dot_dimension_numbers<[1], [0], [0], [1], [0, 0, 1, 1], [], []>} : vector<48x25xbf16>, vector<25x512xbf16>, vector<48x512xf32> -> vector<48x512xf32>
    %c0_3 = arith.constant 0 : index
    %c0_4 = arith.constant 0 : index
    %3 = vector.load %arg3[%c0_3, %c0_4] : memref<48x1xf32, #tpu.memory_space<vmem>>, vector<48x1xf32>
    %4 = vector.broadcast %3 : vector<48x1xf32> to vector<48x512xf32>
    %5 = arith.addf %2, %4 : vector<48x512xf32>
    %c0_5 = arith.constant 0 : index
    %c0_6 = arith.constant 0 : index
    %6 = vector.load %arg4[%c0_5, %c0_6] : memref<48x512xf32, #tpu.memory_space<vmem>>, vector<48x512xf32>
    tpu.vector_store %arg4[%c0_5, %c0_6], %5 {strides = array<i32>} : memref<48x512xf32, #tpu.memory_space<vmem>>, vector<48x512xf32>,
    return
  }
  func.func @transform_0(%arg0: i32) -> (i32, i32) {
    %c0_i32 = arith.constant 0 : i32
    %c0_i32_0 = arith.constant 0 : i32
    %c0_i32_1 = arith.constant 0 : i32
    return %c0_i32, %c0_i32_0 : i32, i32
  }
  func.func @transform_1(%arg0: i32) -> (i32, i32) {
    %c0_i32 = arith.constant 0 : i32
    %c0_i32_0 = arith.constant 0 : i32
    return %c0_i32, %arg0 : i32, i32
  }
  func.func @transform_2(%arg0: i32) -> (i32, i32) {
    %c0_i32 = arith.constant 0 : i32
    %c0_i32_0 = arith.constant 0 : i32
    %c0_i32_1 = arith.constant 0 : i32
    return %c0_i32, %c0_i32_0 : i32, i32
  }
  func.func @transform_3(%arg0: i32) -> (i32, i32) {
    %c0_i32 = arith.constant 0 : i32
    %c0_i32_0 = arith.constant 0 : i32
    return %c0_i32, %arg0 : i32, i32
  }
}

module attributes {stable_mosaic.version = 11 : i64} {
  func.func @_matmul_icnn_fwd_kernel(%arg0: i32, %arg1: memref<8x200xbf16, #tpu.memory_space<vmem>>, %arg2: memref<200x512xbf16, #tpu.memory_space<vmem>>, %arg3: memref<8x512xf32, #tpu.memory_space<vmem>>, %arg4: memref<8x512xf32, #tpu.memory_space<vmem>>, %arg5: memref<8x512xf32, #tpu.memory_space<vmem>>) attributes {dimension_semantics = [#tpu.dimension_semantics<parallel>], iteration_bounds = array<i64: 1>, scalar_prefetch = 0 : i64, scratch_operands = 0 : i64, tpu.core_type = #tpu.core_type<tc>, window_params = [{pipeline_mode = #tpu.pipeline_mode<synchronous>, transform_indices = @transform_0, window_bounds = array<i64: 8, 200>}, {transform_indices = @transform_1, window_bounds = array<i64: 200, 512>}, {transform_indices = @transform_2, window_bounds = array<i64: 8, 512>}, {transform_indices = @transform_3, window_bounds = array<i64: 8, 512>}, {transform_indices = @transform_4, window_bounds = array<i64: 8, 512>}]} {
    %c0 = arith.constant 0 : index
    %c0_0 = arith.constant 0 : index
    %0 = vector.load %arg1[%c0, %c0_0] : memref<8x200xbf16, #tpu.memory_space<vmem>>, vector<8x200xbf16>
    %c0_1 = arith.constant 0 : index
    %c0_2 = arith.constant 0 : index
    %1 = vector.load %arg2[%c0_1, %c0_2] : memref<200x512xbf16, #tpu.memory_space<vmem>>, vector<200x512xbf16>
    %cst = arith.constant dense<0.000000e+00> : vector<8x512xf32>
    %2 = tpu.matmul %0, %1, %cst {dimension_numbers = #tpu.dot_dimension_numbers<[1], [0], [0], [1], [0, 0, 1, 1], [], []>} : vector<8x200xbf16>, vector<200x512xbf16>, vector<8x512xf32> -> vector<8x512xf32>
    %c0_3 = arith.constant 0 : index
    %c0_4 = arith.constant 0 : index
    %3 = vector.load %arg3[%c0_3, %c0_4] : memref<8x512xf32, #tpu.memory_space<vmem>>, vector<8x512xf32>
    %4 = arith.mulf %3, %3 : vector<8x512xf32>
    %5 = arith.addf %2, %4 : vector<8x512xf32>
    %c0_5 = arith.constant 0 : index
    %c0_6 = arith.constant 0 : index
    %6 = vector.load %arg4[%c0_5, %c0_6] : memref<8x512xf32, #tpu.memory_space<vmem>>, vector<8x512xf32>
    %7 = arith.addf %5, %6 : vector<8x512xf32>
    %cst_7 = arith.constant 0.000000e+00 : f32
    %8 = vector.broadcast %cst_7 : f32 to vector<8x512xf32>
    %9 = arith.cmpf ogt, %7, %8 : vector<8x512xf32>
    %cst_8 = arith.constant 2.000000e-01 : f32
    %10 = vector.broadcast %cst_8 : f32 to vector<8x512xf32>
    %11 = arith.mulf %10, %7 : vector<8x512xf32>
    %12 = arith.select %9, %7, %11 : vector<8x512xi1>, vector<8x512xf32>
    %c0_9 = arith.constant 0 : index
    %c0_10 = arith.constant 0 : index
    %13 = vector.load %arg5[%c0_9, %c0_10] : memref<8x512xf32, #tpu.memory_space<vmem>>, vector<8x512xf32>
    tpu.vector_store %arg5[%c0_9, %c0_10], %12 {strides = array<i32>} : memref<8x512xf32, #tpu.memory_space<vmem>>, vector<8x512xf32>,
    return
  }
  func.func @transform_0(%arg0: i32) -> (i32, i32) {
    %c0_i32 = arith.constant 0 : i32
    %c0_i32_0 = arith.constant 0 : i32
    %c0_i32_1 = arith.constant 0 : i32
    return %c0_i32, %c0_i32_0 : i32, i32
  }
  func.func @transform_1(%arg0: i32) -> (i32, i32) {
    %c0_i32 = arith.constant 0 : i32
    %c0_i32_0 = arith.constant 0 : i32
    return %c0_i32, %arg0 : i32, i32
  }
  func.func @transform_2(%arg0: i32) -> (i32, i32) {
    %c0_i32 = arith.constant 0 : i32
    %c0_i32_0 = arith.constant 0 : i32
    return %c0_i32, %arg0 : i32, i32
  }
  func.func @transform_3(%arg0: i32) -> (i32, i32) {
    %c0_i32 = arith.constant 0 : i32
    %c0_i32_0 = arith.constant 0 : i32
    return %c0_i32, %arg0 : i32, i32
  }
  func.func @transform_4(%arg0: i32) -> (i32, i32) {
    %c0_i32 = arith.constant 0 : i32
    %c0_i32_0 = arith.constant 0 : i32
    return %c0_i32, %arg0 : i32, i32
  }
}

module attributes {stable_mosaic.version = 11 : i64} {
  func.func @_bwd_elem_kernel(%arg0: i32, %arg1: memref<8x512xf32, #tpu.memory_space<vmem>>, %arg2: memref<8x512xf32, #tpu.memory_space<vmem>>, %arg3: memref<8x512xf32, #tpu.memory_space<vmem>>, %arg4: memref<16x512xf32, #tpu.memory_space<vmem>>) attributes {dimension_semantics = [#tpu.dimension_semantics<parallel>], iteration_bounds = array<i64: 1>, scalar_prefetch = 0 : i64, scratch_operands = 0 : i64, tpu.core_type = #tpu.core_type<tc>, window_params = [{transform_indices = @transform_0, window_bounds = array<i64: 8, 512>}, {transform_indices = @transform_1, window_bounds = array<i64: 8, 512>}, {transform_indices = @transform_2, window_bounds = array<i64: 8, 512>}, {transform_indices = @transform_3, window_bounds = array<i64: 16, 512>}]} {
    %c0 = arith.constant 0 : index
    %c0_0 = arith.constant 0 : index
    %0 = vector.load %arg1[%c0, %c0_0] : memref<8x512xf32, #tpu.memory_space<vmem>>, vector<8x512xf32>
    %c0_1 = arith.constant 0 : index
    %c0_2 = arith.constant 0 : index
    %1 = vector.load %arg2[%c0_1, %c0_2] : memref<8x512xf32, #tpu.memory_space<vmem>>, vector<8x512xf32>
    %cst = arith.constant 0.000000e+00 : f32
    %2 = vector.broadcast %cst : f32 to vector<8x512xf32>
    %3 = arith.cmpf ogt, %1, %2 : vector<8x512xf32>
    %cst_3 = arith.constant 1.000000e+00 : f32
    %cst_4 = arith.constant 2.000000e-01 : f32
    %4 = vector.broadcast %cst_3 : f32 to vector<8x512xf32>
    %5 = vector.broadcast %cst_4 : f32 to vector<8x512xf32>
    %6 = arith.select %3, %4, %5 : vector<8x512xi1>, vector<8x512xf32>
    %7 = arith.mulf %0, %6 : vector<8x512xf32>
    %c0_5 = arith.constant 0 : index
    %c0_6 = arith.constant 0 : index
    %8 = vector.load %arg3[%c0_5, %c0_6] : memref<8x512xf32, #tpu.memory_space<vmem>>, vector<8x512xf32>
    %cst_7 = arith.constant 2.000000e+00 : f32
    %9 = vector.broadcast %cst_7 : f32 to vector<8x512xf32>
    %10 = arith.mulf %9, %8 : vector<8x512xf32>
    %11 = arith.mulf %10, %7 : vector<8x512xf32>
    %c0_8 = arith.constant 0 : index
    %c0_9 = arith.constant 0 : index
    %12 = vector.load %arg4[%c0_8, %c0_9] : memref<16x512xf32, #tpu.memory_space<vmem>>, vector<8x512xf32>
    tpu.vector_store %arg4[%c0_8, %c0_9], %11 {strides = array<i32>} : memref<16x512xf32, #tpu.memory_space<vmem>>, vector<8x512xf32>,
    %c8 = arith.constant 8 : index
    %c0_10 = arith.constant 0 : index
    %13 = vector.load %arg4[%c8, %c0_10] : memref<16x512xf32, #tpu.memory_space<vmem>>, vector<8x512xf32>
    tpu.vector_store %arg4[%c8, %c0_10], %7 {strides = array<i32>} : memref<16x512xf32, #tpu.memory_space<vmem>>, vector<8x512xf32>,
    return
  }
  func.func @transform_0(%arg0: i32) -> (i32, i32) {
    %c0_i32 = arith.constant 0 : i32
    %c0_i32_0 = arith.constant 0 : i32
    return %c0_i32, %arg0 : i32, i32
  }
  func.func @transform_1(%arg0: i32) -> (i32, i32) {
    %c0_i32 = arith.constant 0 : i32
    %c0_i32_0 = arith.constant 0 : i32
    return %c0_i32, %arg0 : i32, i32
  }
  func.func @transform_2(%arg0: i32) -> (i32, i32) {
    %c0_i32 = arith.constant 0 : i32
    %c0_i32_0 = arith.constant 0 : i32
    return %c0_i32, %arg0 : i32, i32
  }
  func.func @transform_3(%arg0: i32) -> (i32, i32) {
    %c0_i32 = arith.constant 0 : i32
    %c0_i32_0 = arith.constant 0 : i32
    return %c0_i32, %arg0 : i32, i32
  }
}

module attributes {stable_mosaic.version = 11 : i64} {
  func.func @_matmul_kernel(%arg0: i32, %arg1: memref<9x400xbf16, #tpu.memory_space<vmem>>, %arg2: memref<400x512xbf16, #tpu.memory_space<vmem>>, %arg3: memref<9x512xf32, #tpu.memory_space<vmem>>) attributes {dimension_semantics = [#tpu.dimension_semantics<parallel>], iteration_bounds = array<i64: 1>, scalar_prefetch = 0 : i64, scratch_operands = 0 : i64, tpu.core_type = #tpu.core_type<tc>, window_params = [{pipeline_mode = #tpu.pipeline_mode<synchronous>, transform_indices = @transform_0, window_bounds = array<i64: 9, 400>}, {transform_indices = @transform_1, window_bounds = array<i64: 400, 512>}, {transform_indices = @transform_2, window_bounds = array<i64: 9, 512>}]} {
    %c0 = arith.constant 0 : index
    %c0_0 = arith.constant 0 : index
    %0 = vector.load %arg1[%c0, %c0_0] : memref<9x400xbf16, #tpu.memory_space<vmem>>, vector<9x400xbf16>
    %c0_1 = arith.constant 0 : index
    %c0_2 = arith.constant 0 : index
    %1 = vector.load %arg2[%c0_1, %c0_2] : memref<400x512xbf16, #tpu.memory_space<vmem>>, vector<400x512xbf16>
    %cst = arith.constant dense<0.000000e+00> : vector<9x512xf32>
    %2 = tpu.matmul %0, %1, %cst {dimension_numbers = #tpu.dot_dimension_numbers<[1], [0], [0], [1], [0, 0, 1, 1], [], []>} : vector<9x400xbf16>, vector<400x512xbf16>, vector<9x512xf32> -> vector<9x512xf32>
    %c0_3 = arith.constant 0 : index
    %c0_4 = arith.constant 0 : index
    %3 = vector.load %arg3[%c0_3, %c0_4] : memref<9x512xf32, #tpu.memory_space<vmem>>, vector<9x512xf32>
    tpu.vector_store %arg3[%c0_3, %c0_4], %2 {strides = array<i32>} : memref<9x512xf32, #tpu.memory_space<vmem>>, vector<9x512xf32>,
    return
  }
  func.func @transform_0(%arg0: i32) -> (i32, i32) {
    %c0_i32 = arith.constant 0 : i32
    %c0_i32_0 = arith.constant 0 : i32
    %c0_i32_1 = arith.constant 0 : i32
    return %c0_i32, %c0_i32_0 : i32, i32
  }
  func.func @transform_1(%arg0: i32) -> (i32, i32) {
    %c0_i32 = arith.constant 0 : i32
    %c0_i32_0 = arith.constant 0 : i32
    return %c0_i32, %arg0 : i32, i32
  }
  func.func @transform_2(%arg0: i32) -> (i32, i32) {
    %c0_i32 = arith.constant 0 : i32
    %c0_i32_0 = arith.constant 0 : i32
    return %c0_i32, %arg0 : i32, i32
  }
}

module attributes {stable_mosaic.version = 11 : i64} {
  func.func @_matmul_kernel(%arg0: i32, %arg1: memref<1x400xbf16, #tpu.memory_space<vmem>>, %arg2: memref<400x512xbf16, #tpu.memory_space<vmem>>, %arg3: memref<1x512xf32, #tpu.memory_space<vmem>>) attributes {dimension_semantics = [#tpu.dimension_semantics<parallel>], iteration_bounds = array<i64: 1>, scalar_prefetch = 0 : i64, scratch_operands = 0 : i64, tpu.core_type = #tpu.core_type<tc>, window_params = [{pipeline_mode = #tpu.pipeline_mode<synchronous>, transform_indices = @transform_0, window_bounds = array<i64: 1, 400>}, {transform_indices = @transform_1, window_bounds = array<i64: 400, 512>}, {transform_indices = @transform_2, window_bounds = array<i64: 1, 512>}]} {
    %c0 = arith.constant 0 : index
    %c0_0 = arith.constant 0 : index
    %0 = vector.load %arg1[%c0, %c0_0] : memref<1x400xbf16, #tpu.memory_space<vmem>>, vector<1x400xbf16>
    %c0_1 = arith.constant 0 : index
    %c0_2 = arith.constant 0 : index
    %1 = vector.load %arg2[%c0_1, %c0_2] : memref<400x512xbf16, #tpu.memory_space<vmem>>, vector<400x512xbf16>
    %cst = arith.constant dense<0.000000e+00> : vector<1x512xf32>
    %2 = tpu.matmul %0, %1, %cst {dimension_numbers = #tpu.dot_dimension_numbers<[1], [0], [0], [1], [0, 0, 1, 1], [], []>} : vector<1x400xbf16>, vector<400x512xbf16>, vector<1x512xf32> -> vector<1x512xf32>
    %c0_3 = arith.constant 0 : index
    %c0_4 = arith.constant 0 : index
    %3 = vector.load %arg3[%c0_3, %c0_4] : memref<1x512xf32, #tpu.memory_space<vmem>>, vector<1x512xf32>
    tpu.vector_store %arg3[%c0_3, %c0_4], %2 {strides = array<i32>} : memref<1x512xf32, #tpu.memory_space<vmem>>, vector<1x512xf32>,
    return
  }
  func.func @transform_0(%arg0: i32) -> (i32, i32) {
    %c0_i32 = arith.constant 0 : i32
    %c0_i32_0 = arith.constant 0 : i32
    %c0_i32_1 = arith.constant 0 : i32
    return %c0_i32, %c0_i32_0 : i32, i32
  }
  func.func @transform_1(%arg0: i32) -> (i32, i32) {
    %c0_i32 = arith.constant 0 : i32
    %c0_i32_0 = arith.constant 0 : i32
    return %c0_i32, %arg0 : i32, i32
  }
  func.func @transform_2(%arg0: i32) -> (i32, i32) {
    %c0_i32 = arith.constant 0 : i32
    %c0_i32_0 = arith.constant 0 : i32
    return %c0_i32, %arg0 : i32, i32
  }
}

</mosaic_0001>

<bundles_post_ra>
// kernel: _lambda_.41
= control target key start
LH: loop header
LB: loop body
LE: loop exit
PB: predicated region body
PF: predicated region fallthrough
CT: control target
= control target key end

     0   :  { %s98_s0 = inlined_call_operand.vmem [shape: f32[8,512], index: 0, kind: input, shape index: {}]   ;;  %s99_s1 = inlined_call_operand.vmem [shape: f32[8,512], index: 1, kind: input, shape index: {}]   ;;  %s100_s2 = inlined_call_operand.vmem [shape: f32[8,512], index: 2, kind: output, shape index: {}]  }
   0x1   :  { %v11_v0 = vld [vmem:[%s98_s0] sm:$0xff]  ;;  %v12_v2 = vld [vmem:[%s98_s0 + $0x8] sm:$0xff]  ;;  %v13_v6 = vld [vmem:[%s98_s0 + $0x10] sm:$0xff] }
   0x2   :  { %v19_v1 = vld [vmem:[%s99_s1] sm:$0xff]  ;;  %v15_v3 = vmul.f32 %v11_v0, %v11_v0  ;;  %v16_v4 = vmul.f32 %v12_v2, %v12_v2  ;;  %v20_v5 = vld [vmem:[%s99_s1 + $0x8] sm:$0xff]  ;;  %v21_v7 = vld [vmem:[%s99_s1 + $0x10] sm:$0xff]  ;;  %v17_v8 = vmul.f32 %v13_v6, %v13_v6 }
   0x3   :  { %v14_v9 = vld [vmem:[%s98_s0 + $0x18] sm:$0xff] }
   0x4   :  { %v23_v10 = vadd.f32 %v19_v1, %v15_v3  ;;  %v24_v11 = vadd.f32 %v20_v5, %v16_v4  ;;  %v18_v12 = vmul.f32 %v14_v9, %v14_v9  ;;  %v22_v13 = vld [vmem:[%s99_s1 + $0x18] sm:$0xff]  ;;  %v25_v14 = vadd.f32 %v21_v7, %v17_v8 }
   0x6   :  { %vm27_vm0 = vcmp.gt.f32.partialorder %v23_v10, 0.0  ;;  %v31_v15 = vmul.f32 0.2, %v23_v10  ;;  %vm28_vm1 = vcmp.gt.f32.partialorder %v24_v11, 0.0  ;;  %v32_v16 = vmul.f32 0.2, %v24_v11 }
   0x7   :  { %vm29_vm2 = vcmp.gt.f32.partialorder %v25_v14, 0.0  ;;  %v33_v17 = vmul.f32 0.2, %v25_v14  ;;  %v26_v18 = vadd.f32 %v22_v13, %v18_v12 }
   0x8   :  { %v35_v19 = vsel %vm27_vm0, %v23_v10, %v31_v15  ;;  %v36_v20 = vsel %vm28_vm1, %v24_v11, %v32_v16 }
   0x9   :  { %39 = vst [vmem:[%s100_s2] sm:$0xff] %v35_v19  ;;  %40 = vst [vmem:[%s100_s2 + $0x8] sm:$0xff] %v36_v20  ;;  %v37_v21 = vsel %vm29_vm2, %v25_v14, %v33_v17  ;;  %vm30_vm3 = vcmp.gt.f32.partialorder %v26_v18, 0.0  ;;  %v34_v22 = vmul.f32 0.2, %v26_v18 }
   0xa   :  { %41 = vst [vmem:[%s100_s2 + $0x10] sm:$0xff] %v37_v21 }
   0xb   :  { %v38_v23 = vsel %vm30_vm3, %v26_v18, %v34_v22 }
   0xc   :  { %42 = vst [vmem:[%s100_s2 + $0x18] sm:$0xff] %v38_v23 }

// kernel: _lambda_.40
= control target key start
LH: loop header
LB: loop body
LE: loop exit
PB: predicated region body
PF: predicated region fallthrough
CT: control target
= control target key end

     0   :  { %vm126_vm0 = vcmask 1043456   ;;  %vm127_vm1 = vcmask 1044480   ;;  %v332_v1 = vmov 65535   ;;  %v333_v3 = vmov 0   ;;  %s483_s1 = inlined_call_operand.vmem [shape: bf16[25,512], index: 1, kind: input, shape index: {}]   ;;  %s484_s0 = inlined_call_operand.vmem [shape: bf16[48,25], index: 0, kind: input, shape index: {}]   ;;  %s485_s2 = inlined_call_operand.vmem [shape: f32[48,1], index: 2, kind: input, shape index: {}]   ;;  %s486_s3 = inlined_call_operand.vmem [shape: f32[48,512], index: 3, kind: output, shape index: {}]  }
   0x1   :  { %v317_v0 = vld [vmem:[%s483_s1 + $0x4] ss:$16 sps:$4 sm:$0xff]   ;;  %v128_v2 = vsel %vm126_vm0, 4294967295, %v332_v1  ;;  %174 = vmatprep.mubr.bf16.mxu0 %v333_v3  ;;  %237 = vmatprep.mubr.bf16.mxu1 %v333_v3  ;;  %v319_v4 = vld [vmem:[%s483_s1 + $0xc] ss:$16 sps:$4 sm:$0xff]   ;;  %vm116_vm2 = vcmask 203776  }
   0x2   :  { %315 = vset.pattern.permute.xlu0 %v333_v3  ;;  %316 = vset.pattern.permute.xlu1 %v333_v3  ;;  %v321_v5 = vld [vmem:[%s483_s1] ss:$16 sps:$4 sm:$0xff]   ;;  %v322_v6 = vld [vmem:[%s483_s1 + $0x8] ss:$16 sps:$4 sm:$0xff]   ;;  %v129_v7 = vsel %vm127_vm1, %v128_v2, 0 }
   0x3   :  { %142 = vmatprep.subr.bf16.mxu0 %v317_v0  ;;  %205 = vmatprep.subr.bf16.mxu1 %v319_v4  ;;  %v323_v8 = vld [vmem:[%s483_s1 + $0x24] ss:$16 sps:$4 sm:$0x1f]   ;;  %v325_v9 = vld [vmem:[%s483_s1 + $0x2c] ss:$16 sps:$4 sm:$0x1f]  }
   0x4   :  { %143 = vmatpush1.bf16.msra.mxu0 %v321_v5  ;;  %206 = vmatpush1.bf16.msra.mxu1 %v322_v6  ;;  %v134_v10 = vand.u32 %v323_v8, %v129_v7  ;;  %v327_v11 = vld [vmem:[%s483_s1 + $0x20] ss:$16 sps:$4 sm:$0x1f]   ;;  %v328_v12 = vld [vmem:[%s483_s1 + $0x28] ss:$16 sps:$4 sm:$0x1f]   ;;  %v140_v13 = vand.u32 %v325_v9, %v129_v7 }
   0x5   :  { %v131_v14 = vand.u32 %v327_v11, %v129_v7  ;;  %v137_v15 = vand.u32 %v328_v12, %v129_v7  ;;  %v329_v16 = vld [vmem:[%s484_s0] sm:$0xff]   ;;  %v31_v18 = vld [vmem:[%s485_s2 + $0x10] sm:$0xff]  ;;  %v30_v19 = vld [vmem:[%s485_s2 + $0x8] sm:$0xff] }
   0x6   :  { %144 = vmatprep.subr.bf16.mxu0 %v134_v10  ;;  %207 = vmatprep.subr.bf16.mxu1 %v140_v13  ;;  %v29_v17 = vld [vmem:[%s485_s2] sm:$0xff]  ;;  %v32_v20 = vld [vmem:[%s485_s2 + $0x18] sm:$0xff]  ;;  %v34_v21 = vld [vmem:[%s485_s2 + $0x28] sm:$0xff] }
   0x7   :  { %37 = vperm.xlu0 %315, %v29_v17   ;;  %47 = vperm.xlu1 %316, %v31_v18   ;;  %v33_v22 = vld [vmem:[%s485_s2 + $0x20] sm:$0xff]  ;;  %v330_v23 = vld [vmem:[%s484_s0 + $0x8] sm:$0xff]   ;;  %v331_v24 = vld [vmem:[%s484_s0 + $0x10] sm:$0xff]  }
   0x8   :  { %145 = vmatpush1.bf16.msra.mxu0 %v131_v14  ;;  %208 = vmatpush1.bf16.msra.mxu1 %v137_v15 }
   0xb   :  { %307 = vmatmul.mubr.msk.bf16.vlgmr.msra.gmra.mrb[0].mxu0 %vm116_vm2, %v329_v16  ;;  %310 = vmatmul.mubr.msk.bf16.vlgmr.msra.gmra.mrb[0].mxu1 %vm116_vm2, %v329_v16 }
   0xc   :  { %184 = vmatprep.mubr.bf16.mxu0 %v333_v3  ;;  %247 = vmatprep.mubr.bf16.mxu1 %v333_v3 }
   0xd   :  { %42 = vperm.xlu0 %315, %v30_v19   ;;  %52 = vperm.xlu1 %316, %v32_v20  }
  0x11   :  { %62 = vperm.xlu1 %316, %v34_v21   ;;  %57 = vperm.xlu0 %315, %v33_v22  }
  0x13   :  { %308 = vmatmul.mubr.msk.bf16.gmra.mrb[4].mxu0 %vm116_vm2, %v330_v23  ;;  %311 = vmatmul.mubr.msk.bf16.gmra.mrb[4].mxu1 %vm116_vm2, %v330_v23 }
  0x14   :  { %194 = vmatprep.mubr.bf16.mxu0 %v333_v3  ;;  %257 = vmatprep.mubr.bf16.mxu1 %v333_v3 }
  0x1b   :  { %309 = vmatmul.mubr.msk.bf16.gmra.mrb[8].mxu0 %vm116_vm2, %v331_v24  ;;  %312 = vmatmul.mubr.msk.bf16.gmra.mrb[8].mxu1 %vm116_vm2, %v331_v24 }
  0x86   :  { %v38_v25 = vpop.permute.xlu0 %37  ;;  %v48_v27 = vpop.permute.xlu1 %47 }
  0x8c   :  { %v43_v26 = vpop.permute.xlu0 %42  ;;  %v53_v44 = vpop.permute.xlu1 %52 }
  0x90   :  { %v63_v61 = vpop.permute.xlu1 %62  ;;  %v58_v62 = vpop.permute.xlu0 %57 }
  0xde   :  { %v176_v28 = vpop.f32.mrb[0].mxu0  ;;  %v239_v29 = vpop.f32.mrb[0].mxu1 }
  0xdf   :  { %v177_v30 = vadd.f32 %v176_v28, %v38_v25  ;;  %v240_v31 = vadd.f32 %v239_v29, %v38_v25  ;;  %v178_v32 = vpop.f32.mrb[1].mxu0  ;;  %v241_v33 = vpop.f32.mrb[1].mxu1 }
  0xe0   :  { %v179_v34 = vadd.f32 %v178_v32, %v38_v25  ;;  %v242_v35 = vadd.f32 %v241_v33, %v38_v25  ;;  %v180_v36 = vpop.f32.mrb[2].mxu0  ;;  %v243_v37 = vpop.f32.mrb[2].mxu1 }
  0xe1   :  { %268 = vst [vmem:[%s486_s3] sm:$0xff] %v177_v30  ;;  %270 = vst [vmem:[%s486_s3 + $0x10] sm:$0xff] %v240_v31  ;;  %v181_v38 = vadd.f32 %v180_v36, %v43_v26  ;;  %v244_v39 = vadd.f32 %v243_v37, %v43_v26  ;;  %v182_v40 = vpop.f32.mrb[3].mxu0  ;;  %v245_v41 = vpop.f32.mrb[3].mxu1 }
  0xe2   :  { %269 = vst [vmem:[%s486_s3 + $0x8] sm:$0xff] %v179_v34  ;;  %271 = vst [vmem:[%s486_s3 + $0x18] sm:$0xff] %v242_v35  ;;  %v183_v42 = vadd.f32 %v182_v40, %v43_v26  ;;  %v246_v43 = vadd.f32 %v245_v41, %v43_v26 }
  0xe3   :  { %272 = vst [vmem:[%s486_s3 + $0x20] sm:$0xff] %v181_v38  ;;  %274 = vst [vmem:[%s486_s3 + $0x30] sm:$0xff] %v244_v39 }
  0xe4   :  { %273 = vst [vmem:[%s486_s3 + $0x28] sm:$0xff] %v183_v42  ;;  %275 = vst [vmem:[%s486_s3 + $0x38] sm:$0xff] %v246_v43 }
  0xe6   :  { %v186_v45 = vpop.f32.mrb[4].mxu0  ;;  %v249_v46 = vpop.f32.mrb[4].mxu1 }
  0xe7   :  { %v187_v47 = vadd.f32 %v186_v45, %v48_v27  ;;  %v250_v48 = vadd.f32 %v249_v46, %v48_v27  ;;  %v188_v49 = vpop.f32.mrb[5].mxu0  ;;  %v251_v50 = vpop.f32.mrb[5].mxu1 }
  0xe8   :  { %v189_v51 = vadd.f32 %v188_v49, %v48_v27  ;;  %v252_v52 = vadd.f32 %v251_v50, %v48_v27  ;;  %v190_v53 = vpop.f32.mrb[6].mxu0  ;;  %v253_v54 = vpop.f32.mrb[6].mxu1 }
  0xe9   :  { %276 = vst [vmem:[%s486_s3 + $0x40] sm:$0xff] %v187_v47  ;;  %278 = vst [vmem:[%s486_s3 + $0x50] sm:$0xff] %v250_v48  ;;  %v191_v55 = vadd.f32 %v190_v53, %v53_v44  ;;  %v254_v56 = vadd.f32 %v253_v54, %v53_v44  ;;  %v192_v57 = vpop.f32.mrb[7].mxu0  ;;  %v255_v58 = vpop.f32.mrb[7].mxu1 }
  0xea   :  { %277 = vst [vmem:[%s486_s3 + $0x48] sm:$0xff] %v189_v51  ;;  %279 = vst [vmem:[%s486_s3 + $0x58] sm:$0xff] %v252_v52  ;;  %v193_v59 = vadd.f32 %v192_v57, %v53_v44  ;;  %v256_v60 = vadd.f32 %v255_v58, %v53_v44 }
  0xeb   :  { %280 = vst [vmem:[%s486_s3 + $0x60] sm:$0xff] %v191_v55  ;;  %282 = vst [vmem:[%s486_s3 + $0x70] sm:$0xff] %v254_v56 }
  0xec   :  { %281 = vst [vmem:[%s486_s3 + $0x68] sm:$0xff] %v193_v59  ;;  %283 = vst [vmem:[%s486_s3 + $0x78] sm:$0xff] %v256_v60 }
  0xee   :  { %v196_v63 = vpop.f32.mrb[8].mxu0  ;;  %v259_v0 = vpop.f32.mrb[8].mxu1 }
  0xef   :  { %v197_v1 = vadd.f32 %v196_v63, %v58_v62  ;;  %v260_v2 = vadd.f32 %v259_v0, %v58_v62  ;;  %v198_v3 = vpop.f32.mrb[9].mxu0  ;;  %v261_v4 = vpop.f32.mrb[9].mxu1 }
  0xf0   :  { %v199_v5 = vadd.f32 %v198_v3, %v58_v62  ;;  %v262_v6 = vadd.f32 %v261_v4, %v58_v62  ;;  %v200_v7 = vpop.f32.mrb[10].mxu0  ;;  %v263_v8 = vpop.f32.mrb[10].mxu1 }
  0xf1   :  { %284 = vst [vmem:[%s486_s3 + $0x80] sm:$0xff] %v197_v1  ;;  %286 = vst [vmem:[%s486_s3 + $0x90] sm:$0xff] %v260_v2  ;;  %v201_v9 = vadd.f32 %v200_v7, %v63_v61  ;;  %v264_v10 = vadd.f32 %v263_v8, %v63_v61  ;;  %v202_v11 = vpop.f32.mrb[11].mxu0  ;;  %v265_v12 = vpop.f32.mrb[11].mxu1 }
  0xf2   :  { %285 = vst [vmem:[%s486_s3 + $0x88] sm:$0xff] %v199_v5  ;;  %287 = vst [vmem:[%s486_s3 + $0x98] sm:$0xff] %v262_v6  ;;  %v203_v13 = vadd.f32 %v202_v11, %v63_v61  ;;  %v266_v14 = vadd.f32 %v265_v12, %v63_v61 }
  0xf3   :  { %288 = vst [vmem:[%s486_s3 + $0xa0] sm:$0xff] %v201_v9  ;;  %290 = vst [vmem:[%s486_s3 + $0xb0] sm:$0xff] %v264_v10 }
  0xf4   :  { %289 = vst [vmem:[%s486_s3 + $0xa8] sm:$0xff] %v203_v13  ;;  %291 = vst [vmem:[%s486_s3 + $0xb8] sm:$0xff] %v266_v14 }

// kernel: _lambda_.44
= control target key start
LH: loop header
LB: loop body
LE: loop exit
PB: predicated region body
PF: predicated region fallthrough
CT: control target
= control target key end

     0   :  { %v59_v7 = vmov 0.2   ;;  %s140_s0 = inlined_call_operand.vmem [shape: f32[8,512], index: 0, kind: input, shape index: {}]   ;;  %s141_s1 = inlined_call_operand.vmem [shape: f32[8,512], index: 1, kind: input, shape index: {}]   ;;  %s142_s2 = inlined_call_operand.vmem [shape: f32[8,512], index: 2, kind: input, shape index: {}]   ;;  %s143_s3 = inlined_call_operand.vmem [shape: f32[16,512], index: 3, kind: output, shape index: {}]  }
   0x1   :  { %v14_v0 = vld [vmem:[%s140_s0] sm:$0xff]  ;;  %v15_v4 = vld [vmem:[%s140_s0 + $0x8] sm:$0xff]  ;;  %v16_v10 = vld [vmem:[%s140_s0 + $0x10] sm:$0xff] }
   0x2   :  { %v18_v1 = vld [vmem:[%s141_s1] sm:$0xff]  ;;  %v19_v5 = vld [vmem:[%s141_s1 + $0x8] sm:$0xff]  ;;  %v20_v11 = vld [vmem:[%s141_s1 + $0x10] sm:$0xff] }
   0x3   :  { %v34_v2 = vld [vmem:[%s142_s2] sm:$0xff]  ;;  %vm22_vm0 = vcmp.gt.f32.partialorder %v18_v1, 0.0  ;;  %v35_v6 = vld [vmem:[%s142_s2 + $0x8] sm:$0xff]  ;;  %vm23_vm1 = vcmp.gt.f32.partialorder %v19_v5, 0.0  ;;  %v36_v12 = vld [vmem:[%s142_s2 + $0x10] sm:$0xff]  ;;  %vm24_vm2 = vcmp.gt.f32.partialorder %v20_v11, 0.0 }
   0x4   :  { %v38_v3 = vmul.f32 2.0, %v34_v2  ;;  %v26_v8 = vsel %vm22_vm0, 1.0, %v59_v7  ;;  %v39_v9 = vmul.f32 2.0, %v35_v6  ;;  %v27_v14 = vsel %vm23_vm1, 1.0, %v59_v7  ;;  %v17_v16 = vld [vmem:[%s140_s0 + $0x18] sm:$0xff] }
   0x5   :  { %v30_v13 = vmul.f32 %v26_v8, %v14_v0  ;;  %v40_v15 = vmul.f32 2.0, %v36_v12  ;;  %v21_v17 = vld [vmem:[%s141_s1 + $0x18] sm:$0xff]  ;;  %v31_v19 = vmul.f32 %v27_v14, %v15_v4  ;;  %v28_v20 = vsel %vm24_vm2, 1.0, %v59_v7 }
   0x6   :  { %v37_v18 = vld [vmem:[%s142_s2 + $0x18] sm:$0xff]  ;;  %vm25_vm3 = vcmp.gt.f32.partialorder %v21_v17, 0.0  ;;  %v32_v23 = vmul.f32 %v28_v20, %v16_v10 }
   0x7   :  { %v41_v21 = vmul.f32 2.0, %v37_v18  ;;  %v42_v22 = vmul.f32 %v38_v3, %v30_v13  ;;  %50 = vst [vmem:[%s143_s3 + $0x20] sm:$0xff] %v30_v13  ;;  %v29_v24 = vsel %vm25_vm3, 1.0, %v59_v7  ;;  %v43_v25 = vmul.f32 %v39_v9, %v31_v19  ;;  %51 = vst [vmem:[%s143_s3 + $0x28] sm:$0xff] %v31_v19 }
   0x8   :  { %v33_v26 = vmul.f32 %v29_v24, %v17_v16  ;;  %v44_v27 = vmul.f32 %v40_v15, %v32_v23  ;;  %52 = vst [vmem:[%s143_s3 + $0x30] sm:$0xff] %v32_v23 }
   0x9   :  { %46 = vst [vmem:[%s143_s3] sm:$0xff] %v42_v22  ;;  %47 = vst [vmem:[%s143_s3 + $0x8] sm:$0xff] %v43_v25 }
   0xa   :  { %v45_v28 = vmul.f32 %v41_v21, %v33_v26  ;;  %53 = vst [vmem:[%s143_s3 + $0x38] sm:$0xff] %v33_v26  ;;  %48 = vst [vmem:[%s143_s3 + $0x10] sm:$0xff] %v44_v27 }
   0xc   :  { %49 = vst [vmem:[%s143_s3 + $0x18] sm:$0xff] %v45_v28 }

// kernel: _lambda_.42
= control target key start
LH: loop header
LB: loop body
LE: loop exit
PB: predicated region body
PF: predicated region fallthrough
CT: control target
= control target key end

     0   :  { %vm333_vm0 = vcmask 588800   ;;  %vm337_vm1 = vcmask 1043456   ;;  %s810_s1 = inlined_call_operand.vmem [shape: bf16[200,512], index: 1, kind: input, shape index: {}]   ;;  %s811_s0 = inlined_call_operand.vmem [shape: bf16[8,200], index: 0, kind: input, shape index: {}]   ;;  %s812_s2 = inlined_call_operand.vmem [shape: f32[8,512], index: 2, kind: input, shape index: {}]   ;;  %s813_s3 = inlined_call_operand.vmem [shape: f32[8,512], index: 3, kind: input, shape index: {}]   ;;  %s814_s4 = inlined_call_operand.vmem [shape: f32[8,512], index: 4, kind: output, shape index: {}]  }
   0x1   :  { %v518_v0 = vld [vmem:[%s810_s1 + $0x4] ss:$16 sps:$4 sm:$0xff]   ;;  %v520_v1 = vld [vmem:[%s810_s1 + $0xc] ss:$16 sps:$4 sm:$0xff]   ;;  %v522_v2 = vld [vmem:[%s810_s1] ss:$16 sps:$4 sm:$0xff]  }
   0x2   :  { %350 = vmatprep.subr.bf16.mxu0 %v518_v0  ;;  %v523_v3 = vld [vmem:[%s810_s1 + $0x8] ss:$16 sps:$4 sm:$0xff]   ;;  %391 = vmatprep.subr.bf16.mxu1 %v520_v1  ;;  %v524_v4 = vld [vmem:[%s810_s1 + $0x24] ss:$16 sps:$4 sm:$0xff]   ;;  %v526_v5 = vld [vmem:[%s810_s1 + $0x2c] ss:$16 sps:$4 sm:$0xff]  }
   0x3   :  { %351 = vmatpush1.bf16.msra.mxu0 %v522_v2  ;;  %392 = vmatpush1.bf16.msra.mxu1 %v523_v3  ;;  %v528_v6 = vld [vmem:[%s810_s1 + $0x20] ss:$16 sps:$4 sm:$0xff]   ;;  %v529_v7 = vld [vmem:[%s810_s1 + $0x28] ss:$16 sps:$4 sm:$0xff]   ;;  %v530_v8 = vld [vmem:[%s810_s1 + $0x44] ss:$16 sps:$4 sm:$0xff]  }
   0x4   :  { %352 = vmatprep.subr.bf16.mxu0 %v524_v4  ;;  %393 = vmatprep.subr.bf16.mxu1 %v526_v5  ;;  %v532_v9 = vld [vmem:[%s810_s1 + $0x4c] ss:$16 sps:$4 sm:$0xff]   ;;  %v534_v10 = vld [vmem:[%s810_s1 + $0x40] ss:$16 sps:$4 sm:$0xff]   ;;  %v535_v11 = vld [vmem:[%s810_s1 + $0x48] ss:$16 sps:$4 sm:$0xff]  }
   0x5   :  { %v536_v12 = vld [vmem:[%s810_s1 + $0x64] ss:$16 sps:$4 sm:$0xff]   ;;  %v538_v13 = vld [vmem:[%s810_s1 + $0x6c] ss:$16 sps:$4 sm:$0xff]   ;;  %v540_v14 = vld [vmem:[%s810_s1 + $0x60] ss:$16 sps:$4 sm:$0xff]  }
   0x6   :  { %v541_v15 = vld [vmem:[%s810_s1 + $0x68] ss:$16 sps:$4 sm:$0xff]   ;;  %v542_v16 = vld [vmem:[%s810_s1 + $0x84] ss:$16 sps:$4 sm:$0xff]   ;;  %v544_v17 = vld [vmem:[%s810_s1 + $0x8c] ss:$16 sps:$4 sm:$0xff]  }
   0x7   :  { %353 = vmatpush1.bf16.msra.mxu0 %v528_v6  ;;  %394 = vmatpush1.bf16.msra.mxu1 %v529_v7  ;;  %v546_v18 = vld [vmem:[%s810_s1 + $0x80] ss:$16 sps:$4 sm:$0xff]   ;;  %v547_v19 = vld [vmem:[%s810_s1 + $0x88] ss:$16 sps:$4 sm:$0xff]   ;;  %v548_v20 = vld [vmem:[%s810_s1 + $0xa4] ss:$16 sps:$4 sm:$0xff]  }
   0x8   :  { %354 = vmatprep.subr.bf16.mxu0 %v530_v8  ;;  %395 = vmatprep.subr.bf16.mxu1 %v532_v9  ;;  %v550_v21 = vld [vmem:[%s810_s1 + $0xac] ss:$16 sps:$4 sm:$0xff]   ;;  %v552_v22 = vld [vmem:[%s810_s1 + $0xa0] ss:$16 sps:$4 sm:$0xff]   ;;  %v553_v23 = vld [vmem:[%s810_s1 + $0xa8] ss:$16 sps:$4 sm:$0xff]  }
   0x9   :  { %v554_v24 = vld [vmem:[%s810_s1 + $0xc4] ss:$16 sps:$4 sm:$0xff]   ;;  %v556_v25 = vld [vmem:[%s810_s1 + $0xcc] ss:$16 sps:$4 sm:$0xff]   ;;  %v558_v26 = vld [vmem:[%s810_s1 + $0xc0] ss:$16 sps:$4 sm:$0xff]  }
   0xa   :  { %v559_v27 = vld [vmem:[%s810_s1 + $0xc8] ss:$16 sps:$4 sm:$0xff]   ;;  %v560_v28 = vld [vmem:[%s810_s1 + $0xe4] ss:$16 sps:$4 sm:$0xff]   ;;  %v562_v29 = vld [vmem:[%s810_s1 + $0xec] ss:$16 sps:$4 sm:$0xff]  }
   0xb   :  { %355 = vmatpush1.bf16.msra.mxu0 %v534_v10  ;;  %396 = vmatpush1.bf16.msra.mxu1 %v535_v11  ;;  %v564_v30 = vld [vmem:[%s810_s1 + $0xe0] ss:$16 sps:$4 sm:$0xff]   ;;  %v565_v31 = vld [vmem:[%s810_s1 + $0xe8] ss:$16 sps:$4 sm:$0xff]   ;;  %v566_v32 = vld [vmem:[%s810_s1 + $0x104] ss:$16 sps:$4 sm:$0xff]  }
   0xc   :  { %356 = vmatprep.subr.bf16.mxu0 %v536_v12  ;;  %397 = vmatprep.subr.bf16.mxu1 %v538_v13  ;;  %v568_v33 = vld [vmem:[%s810_s1 + $0x10c] ss:$16 sps:$4 sm:$0xff]   ;;  %v570_v34 = vld [vmem:[%s810_s1 + $0x100] ss:$16 sps:$4 sm:$0xff]   ;;  %v571_v35 = vld [vmem:[%s810_s1 + $0x108] ss:$16 sps:$4 sm:$0xff]  }
   0xd   :  { %v18_v36 = vld [vmem:[%s811_s0] sm:$0xff]  ;;  %v574_v38 = vld [vmem:[%s810_s1 + $0x12c] ss:$16 sps:$4 sm:$0xff]   ;;  %v577_v41 = vld [vmem:[%s810_s1 + $0x128] ss:$16 sps:$4 sm:$0xff]  }
   0xe   :  { %v572_v37 = vld [vmem:[%s810_s1 + $0x124] ss:$16 sps:$4 sm:$0xff]   ;;  %v461_v39 = vcombine.high %v18_v36, %v18_v36  ;;  %v576_v40 = vld [vmem:[%s810_s1 + $0x120] ss:$16 sps:$4 sm:$0xff]   ;;  %v580_v43 = vld [vmem:[%s810_s1 + $0x14c] ss:$16 sps:$4 sm:$0xff]   ;;  %v460_v58 = vcombine.low %v18_v36, %v18_v36 }
   0xf   :  { %357 = vmatpush1.bf16.msra.mxu0 %v540_v14  ;;  %398 = vmatpush1.bf16.msra.mxu1 %v541_v15  ;;  %v578_v42 = vld [vmem:[%s810_s1 + $0x144] ss:$16 sps:$4 sm:$0xff]   ;;  %v582_v44 = vld [vmem:[%s810_s1 + $0x140] ss:$16 sps:$4 sm:$0xff]   ;;  %v583_v45 = vld [vmem:[%s810_s1 + $0x148] ss:$16 sps:$4 sm:$0xff]  }
  0x10   :  { %358 = vmatprep.subr.bf16.mxu0 %v542_v16  ;;  %399 = vmatprep.subr.bf16.mxu1 %v544_v17  ;;  %v584_v46 = vld [vmem:[%s810_s1 + $0x164] ss:$16 sps:$4 sm:$0xff]   ;;  %v586_v47 = vld [vmem:[%s810_s1 + $0x16c] ss:$16 sps:$4 sm:$0xff]   ;;  %v588_v50 = vld [vmem:[%s810_s1 + $0x160] ss:$16 sps:$4 sm:$0xff]  }
  0x11   :  { %515 = vmatprep.mubr.msk.bf16.mxu0 %vm333_vm0, %v461_v39  ;;  %517 = vmatprep.mubr.msk.bf16.mxu1 %vm333_vm0, %v461_v39  ;;  %v67_v48 = vld [vmem:[%s810_s1 + $0x180] sm:$0xff]  ;;  %v68_v49 = vld [vmem:[%s810_s1 + $0x188] sm:$0xff]  ;;  %v71_v60 = vld [vmem:[%s812_s2 + $0x10] sm:$0xff] }
  0x12   :  { %v589_v51 = vld [vmem:[%s810_s1 + $0x168] ss:$16 sps:$4 sm:$0xff]   ;;  %v511_v52 = vcombine.high %v67_v48, %v67_v48  ;;  %v513_v53 = vcombine.high %v68_v49, %v68_v49  ;;  %v510_v54 = vcombine.low %v67_v48, %v67_v48  ;;  %v512_v55 = vcombine.low %v68_v49, %v68_v49  ;;  %v69_v59 = vld [vmem:[%s812_s2] sm:$0xff]  ;;  %v434_v6 = vld [vmem:[%s813_s3 + $0x10] sm:$0xff] }
  0x13   :  { %359 = vmatpush1.bf16.msra.mxu0 %v546_v18  ;;  %400 = vmatpush1.bf16.msra.mxu1 %v547_v19  ;;  %v70_v61 = vld [vmem:[%s812_s2 + $0x8] sm:$0xff]  ;;  %v72_v62 = vld [vmem:[%s812_s2 + $0x18] sm:$0xff]  ;;  %v73_v63 = vmul.f32 %v69_v59, %v69_v59  ;;  %v75_v0 = vmul.f32 %v71_v60, %v71_v60  ;;  %v432_v4 = vld [vmem:[%s813_s3] sm:$0xff] }
  0x14   :  { %360 = vmatprep.subr.bf16.mxu0 %v548_v20  ;;  %401 = vmatprep.subr.bf16.mxu1 %v550_v21  ;;  %v339_v56 = vsel %vm337_vm1, %v510_v54, 0  ;;  %v345_v57 = vsel %vm337_vm1, %v512_v55, 0  ;;  %v74_v1 = vmul.f32 %v70_v61, %v70_v61  ;;  %v76_v2 = vmul.f32 %v72_v62, %v72_v62  ;;  %v433_v10 = vld [vmem:[%s813_s3 + $0x8] sm:$0xff]  ;;  %v435_v12 = vld [vmem:[%s813_s3 + $0x18] sm:$0xff] }
  0x17   :  { %361 = vmatpush1.bf16.msra.mxu0 %v552_v22  ;;  %402 = vmatpush1.bf16.msra.mxu1 %v553_v23 }
  0x18   :  { %362 = vmatprep.subr.bf16.mxu0 %v554_v24  ;;  %403 = vmatprep.subr.bf16.mxu1 %v556_v25 }
  0x1b   :  { %363 = vmatpush1.bf16.msra.mxu0 %v558_v26  ;;  %404 = vmatpush1.bf16.msra.mxu1 %v559_v27 }
  0x1c   :  { %364 = vmatprep.subr.bf16.mxu0 %v560_v28  ;;  %405 = vmatprep.subr.bf16.mxu1 %v562_v29 }
  0x1f   :  { %365 = vmatpush1.bf16.msra.mxu0 %v564_v30  ;;  %406 = vmatpush1.bf16.msra.mxu1 %v565_v31 }
  0x20   :  { %366 = vmatprep.subr.bf16.mxu0 %v566_v32  ;;  %407 = vmatprep.subr.bf16.mxu1 %v568_v33 }
  0x23   :  { %367 = vmatpush1.bf16.msra.mxu0 %v570_v34  ;;  %408 = vmatpush1.bf16.msra.mxu1 %v571_v35 }
  0x24   :  { %368 = vmatprep.subr.bf16.mxu0 %v572_v37  ;;  %409 = vmatprep.subr.bf16.mxu1 %v574_v38 }
  0x27   :  { %369 = vmatpush1.bf16.msra.mxu0 %v576_v40  ;;  %410 = vmatpush1.bf16.msra.mxu1 %v577_v41 }
  0x28   :  { %370 = vmatprep.subr.bf16.mxu0 %v578_v42  ;;  %411 = vmatprep.subr.bf16.mxu1 %v580_v43 }
  0x2b   :  { %371 = vmatpush1.bf16.msra.mxu0 %v582_v44  ;;  %412 = vmatpush1.bf16.msra.mxu1 %v583_v45 }
  0x2c   :  { %372 = vmatprep.subr.bf16.mxu0 %v584_v46  ;;  %413 = vmatprep.subr.bf16.mxu1 %v586_v47 }
  0x2f   :  { %373 = vmatpush1.bf16.msra.mxu0 %v588_v50  ;;  %414 = vmatpush1.bf16.msra.mxu1 %v589_v51 }
  0x30   :  { %514 = vmatprep.subr.msk.bf16.mxu0 %vm337_vm1, %v511_v52  ;;  %516 = vmatprep.subr.msk.bf16.mxu1 %vm337_vm1, %v513_v53 }
  0x33   :  { %375 = vmatpush1.bf16.msra.mxu0 %v339_v56  ;;  %416 = vmatpush1.bf16.msra.mxu1 %v345_v57 }
  0x36   :  { %383 = vmatmul.mubr.bf16.vlgmr.msra.gmra.mrb[0].mxu0 %v460_v58  ;;  %424 = vmatmul.mubr.bf16.vlgmr.msra.gmra.mrb[0].mxu1 %v460_v58 }
 0x109   :  { %v384_v3 = vpop.f32.mrb[0].mxu0  ;;  %v425_v5 = vpop.f32.mrb[0].mxu1 }
 0x10a   :  { %v385_v7 = vadd.f32 %v384_v3, %v73_v63  ;;  %v426_v8 = vadd.f32 %v425_v5, %v75_v0  ;;  %v386_v9 = vpop.f32.mrb[1].mxu0  ;;  %v427_v11 = vpop.f32.mrb[1].mxu1 }
 0x10b   :  { %v387_v13 = vadd.f32 %v386_v9, %v74_v1  ;;  %v428_v14 = vadd.f32 %v427_v11, %v76_v2  ;;  %v388_v15 = vpop.f32.mrb[2].mxu0  ;;  %v429_v16 = vpop.f32.mrb[2].mxu1 }
 0x10c   :  { %v436_v17 = vadd.f32 %v432_v4, %v385_v7  ;;  %v438_v18 = vadd.f32 %v434_v6, %v426_v8  ;;  %v389_v19 = vpop.f32.mrb[3].mxu0  ;;  %v430_v20 = vpop.f32.mrb[3].mxu1 }
 0x10d   :  { %v437_v21 = vadd.f32 %v433_v10, %v387_v13  ;;  %v439_v22 = vadd.f32 %v435_v12, %v428_v14 }
 0x10e   :  { %vm440_vm2 = vcmp.gt.f32.partialorder %v436_v17, 0.0  ;;  %v444_v23 = vmul.f32 0.2, %v436_v17  ;;  %vm442_vm3 = vcmp.gt.f32.partialorder %v438_v18, 0.0  ;;  %v446_v24 = vmul.f32 0.2, %v438_v18 }
 0x10f   :  { %vm441_vm4 = vcmp.gt.f32.partialorder %v437_v21, 0.0  ;;  %v445_v25 = vmul.f32 0.2, %v437_v21  ;;  %vm443_vm5 = vcmp.gt.f32.partialorder %v439_v22, 0.0  ;;  %v447_v26 = vmul.f32 0.2, %v439_v22 }
 0x110   :  { %v448_v27 = vsel %vm440_vm2, %v436_v17, %v444_v23  ;;  %v450_v28 = vsel %vm442_vm3, %v438_v18, %v446_v24 }
 0x111   :  { %452 = vst [vmem:[%s814_s4] sm:$0xff] %v448_v27  ;;  %454 = vst [vmem:[%s814_s4 + $0x10] sm:$0xff] %v450_v28  ;;  %v449_v29 = vsel %vm441_vm4, %v437_v21, %v445_v25  ;;  %v451_v30 = vsel %vm443_vm5, %v439_v22, %v447_v26 }
 0x112   :  { %453 = vst [vmem:[%s814_s4 + $0x8] sm:$0xff] %v449_v29  ;;  %455 = vst [vmem:[%s814_s4 + $0x18] sm:$0xff] %v451_v30 }

// kernel: _lambda_.45
= control target key start
LH: loop header
LB: loop body
LE: loop exit
PB: predicated region body
PF: predicated region fallthrough
CT: control target
= control target key end

     0   :  { %vm635_vm0 = vcmask 130048   ;;  %s1444_s1 = inlined_call_operand.vmem [shape: bf16[400,512], index: 1, kind: input, shape index: {}]   ;;  %s1445_s0 = inlined_call_operand.vmem [shape: bf16[9,400], index: 0, kind: input, shape index: {}]   ;;  %s1446_s2 = inlined_call_operand.vmem [shape: f32[9,512], index: 2, kind: output, shape index: {}]  }
   0x1   :  { %v937_v0 = vld [vmem:[%s1444_s1 + $0x4] ss:$16 sps:$4 sm:$0xff]   ;;  %v939_v1 = vld [vmem:[%s1444_s1 + $0xc] ss:$16 sps:$4 sm:$0xff]   ;;  %v941_v2 = vld [vmem:[%s1444_s1] ss:$16 sps:$4 sm:$0xff]  }
   0x2   :  { %639 = vmatprep.subr.bf16.mxu0 %v937_v0  ;;  %v942_v3 = vld [vmem:[%s1444_s1 + $0x8] ss:$16 sps:$4 sm:$0xff]   ;;  %725 = vmatprep.subr.bf16.mxu1 %v939_v1  ;;  %v943_v4 = vld [vmem:[%s1444_s1 + $0x24] ss:$16 sps:$4 sm:$0xff]   ;;  %v945_v5 = vld [vmem:[%s1444_s1 + $0x2c] ss:$16 sps:$4 sm:$0xff]  }
   0x3   :  { %640 = vmatpush1.bf16.msra.mxu0 %v941_v2  ;;  %726 = vmatpush1.bf16.msra.mxu1 %v942_v3  ;;  %v947_v6 = vld [vmem:[%s1444_s1 + $0x20] ss:$16 sps:$4 sm:$0xff]   ;;  %v948_v7 = vld [vmem:[%s1444_s1 + $0x28] ss:$16 sps:$4 sm:$0xff]   ;;  %v949_v8 = vld [vmem:[%s1444_s1 + $0x44] ss:$16 sps:$4 sm:$0xff]  }
   0x4   :  { %641 = vmatprep.subr.bf16.mxu0 %v943_v4  ;;  %727 = vmatprep.subr.bf16.mxu1 %v945_v5  ;;  %v951_v9 = vld [vmem:[%s1444_s1 + $0x4c] ss:$16 sps:$4 sm:$0xff]   ;;  %v953_v10 = vld [vmem:[%s1444_s1 + $0x40] ss:$16 sps:$4 sm:$0xff]   ;;  %v954_v11 = vld [vmem:[%s1444_s1 + $0x48] ss:$16 sps:$4 sm:$0xff]  }
   0x5   :  { %v955_v12 = vld [vmem:[%s1444_s1 + $0x64] ss:$16 sps:$4 sm:$0xff]   ;;  %v957_v13 = vld [vmem:[%s1444_s1 + $0x6c] ss:$16 sps:$4 sm:$0xff]   ;;  %v959_v14 = vld [vmem:[%s1444_s1 + $0x60] ss:$16 sps:$4 sm:$0xff]  }
   0x6   :  { %v960_v15 = vld [vmem:[%s1444_s1 + $0x68] ss:$16 sps:$4 sm:$0xff]   ;;  %v961_v16 = vld [vmem:[%s1444_s1 + $0x84] ss:$16 sps:$4 sm:$0xff]   ;;  %v963_v17 = vld [vmem:[%s1444_s1 + $0x8c] ss:$16 sps:$4 sm:$0xff]  }
   0x7   :  { %642 = vmatpush1.bf16.msra.mxu0 %v947_v6  ;;  %728 = vmatpush1.bf16.msra.mxu1 %v948_v7  ;;  %v965_v18 = vld [vmem:[%s1444_s1 + $0x80] ss:$16 sps:$4 sm:$0xff]   ;;  %v966_v19 = vld [vmem:[%s1444_s1 + $0x88] ss:$16 sps:$4 sm:$0xff]   ;;  %v967_v20 = vld [vmem:[%s1444_s1 + $0xa4] ss:$16 sps:$4 sm:$0xff]  }
   0x8   :  { %643 = vmatprep.subr.bf16.mxu0 %v949_v8  ;;  %729 = vmatprep.subr.bf16.mxu1 %v951_v9  ;;  %v969_v21 = vld [vmem:[%s1444_s1 + $0xac] ss:$16 sps:$4 sm:$0xff]   ;;  %v971_v22 = vld [vmem:[%s1444_s1 + $0xa0] ss:$16 sps:$4 sm:$0xff]   ;;  %v972_v23 = vld [vmem:[%s1444_s1 + $0xa8] ss:$16 sps:$4 sm:$0xff]  }
   0x9   :  { %v973_v24 = vld [vmem:[%s1444_s1 + $0xc4] ss:$16 sps:$4 sm:$0xff]   ;;  %v975_v25 = vld [vmem:[%s1444_s1 + $0xcc] ss:$16 sps:$4 sm:$0xff]   ;;  %v977_v26 = vld [vmem:[%s1444_s1 + $0xc0] ss:$16 sps:$4 sm:$0xff]  }
   0xa   :  { %v978_v27 = vld [vmem:[%s1444_s1 + $0xc8] ss:$16 sps:$4 sm:$0xff]   ;;  %v979_v28 = vld [vmem:[%s1444_s1 + $0xe4] ss:$16 sps:$4 sm:$0xff]   ;;  %v981_v29 = vld [vmem:[%s1444_s1 + $0xec] ss:$16 sps:$4 sm:$0xff]  }
   0xb   :  { %644 = vmatpush1.bf16.msra.mxu0 %v953_v10  ;;  %730 = vmatpush1.bf16.msra.mxu1 %v954_v11  ;;  %v983_v30 = vld [vmem:[%s1444_s1 + $0xe0] ss:$16 sps:$4 sm:$0xff]   ;;  %v984_v31 = vld [vmem:[%s1444_s1 + $0xe8] ss:$16 sps:$4 sm:$0xff]   ;;  %v985_v32 = vld [vmem:[%s1444_s1 + $0x104] ss:$16 sps:$4 sm:$0xff]  }
   0xc   :  { %645 = vmatprep.subr.bf16.mxu0 %v955_v12  ;;  %731 = vmatprep.subr.bf16.mxu1 %v957_v13  ;;  %v987_v33 = vld [vmem:[%s1444_s1 + $0x10c] ss:$16 sps:$4 sm:$0xff]   ;;  %v989_v34 = vld [vmem:[%s1444_s1 + $0x100] ss:$16 sps:$4 sm:$0xff]   ;;  %v990_v35 = vld [vmem:[%s1444_s1 + $0x108] ss:$16 sps:$4 sm:$0xff]  }
   0xd   :  { %v991_v36 = vld [vmem:[%s1444_s1 + $0x124] ss:$16 sps:$4 sm:$0xff]   ;;  %v993_v37 = vld [vmem:[%s1444_s1 + $0x12c] ss:$16 sps:$4 sm:$0xff]   ;;  %v995_v38 = vld [vmem:[%s1444_s1 + $0x120] ss:$16 sps:$4 sm:$0xff]  }
   0xe   :  { %v996_v39 = vld [vmem:[%s1444_s1 + $0x128] ss:$16 sps:$4 sm:$0xff]   ;;  %v997_v40 = vld [vmem:[%s1444_s1 + $0x144] ss:$16 sps:$4 sm:$0xff]   ;;  %v999_v41 = vld [vmem:[%s1444_s1 + $0x14c] ss:$16 sps:$4 sm:$0xff]  }
   0xf   :  { %646 = vmatpush1.bf16.msra.mxu0 %v959_v14  ;;  %732 = vmatpush1.bf16.msra.mxu1 %v960_v15  ;;  %v1001_v42 = vld [vmem:[%s1444_s1 + $0x140] ss:$16 sps:$4 sm:$0xff]   ;;  %v1002_v43 = vld [vmem:[%s1444_s1 + $0x148] ss:$16 sps:$4 sm:$0xff]   ;;  %v1003_v44 = vld [vmem:[%s1444_s1 + $0x164] ss:$16 sps:$4 sm:$0xff]  }
  0x10   :  { %647 = vmatprep.subr.bf16.mxu0 %v961_v16  ;;  %733 = vmatprep.subr.bf16.mxu1 %v963_v17  ;;  %v1005_v45 = vld [vmem:[%s1444_s1 + $0x16c] ss:$16 sps:$4 sm:$0xff]   ;;  %v1007_v46 = vld [vmem:[%s1444_s1 + $0x160] ss:$16 sps:$4 sm:$0xff]   ;;  %v1008_v47 = vld [vmem:[%s1444_s1 + $0x168] ss:$16 sps:$4 sm:$0xff]  }
  0x11   :  { %v1009_v48 = vld [vmem:[%s1444_s1 + $0x184] ss:$16 sps:$4 sm:$0xff]   ;;  %v1011_v50 = vld [vmem:[%s1444_s1 + $0x18c] ss:$16 sps:$4 sm:$0xff]   ;;  %v1013_v51 = vld [vmem:[%s1444_s1 + $0x180] ss:$16 sps:$4 sm:$0xff]  }
  0x12   :  { %v1035_v49 = vld [vmem:[%s1445_s0 + $0x4] ss:$16 sps:$4 sm:$0x1f]   ;;  %v1014_v52 = vld [vmem:[%s1444_s1 + $0x188] ss:$16 sps:$4 sm:$0xff]  }
  0x13   :  { %648 = vmatpush1.bf16.msra.mxu0 %v965_v18  ;;  %734 = vmatpush1.bf16.msra.mxu1 %v966_v19  ;;  %v1015_v53 = vld [vmem:[%s1444_s1 + $0x1a4] ss:$16 sps:$4 sm:$0xff]   ;;  %v1017_v54 = vld [vmem:[%s1444_s1 + $0x1ac] ss:$16 sps:$4 sm:$0xff]   ;;  %v1019_v55 = vld [vmem:[%s1444_s1 + $0x1a0] ss:$16 sps:$4 sm:$0xff]  }
  0x14   :  { %649 = vmatprep.subr.bf16.mxu0 %v967_v20  ;;  %735 = vmatprep.subr.bf16.mxu1 %v969_v21  ;;  %v1020_v56 = vld [vmem:[%s1444_s1 + $0x1a8] ss:$16 sps:$4 sm:$0xff]   ;;  %v1021_v57 = vld [vmem:[%s1444_s1 + $0x1c4] ss:$16 sps:$4 sm:$0xff]   ;;  %v1023_v58 = vld [vmem:[%s1444_s1 + $0x1cc] ss:$16 sps:$4 sm:$0xff]  }
  0x15   :  { %671 = vmatprep.mubr.bf16.mxu0 %v1035_v49  ;;  %757 = vmatprep.mubr.bf16.mxu1 %v1035_v49  ;;  %v1025_v59 = vld [vmem:[%s1444_s1 + $0x1c0] ss:$16 sps:$4 sm:$0xff]   ;;  %v1026_v60 = vld [vmem:[%s1444_s1 + $0x1c8] ss:$16 sps:$4 sm:$0xff]   ;;  %v1027_v61 = vld [vmem:[%s1444_s1 + $0x1e4] ss:$16 sps:$4 sm:$0xff]  }
  0x16   :  { %v1029_v62 = vld [vmem:[%s1444_s1 + $0x1ec] ss:$16 sps:$4 sm:$0xff]   ;;  %v1031_v63 = vld [vmem:[%s1444_s1 + $0x1e0] ss:$16 sps:$4 sm:$0xff]   ;;  %v1032_v0 = vld [vmem:[%s1444_s1 + $0x1e8] ss:$16 sps:$4 sm:$0xff]  }
  0x17   :  { %650 = vmatpush1.bf16.msra.mxu0 %v971_v22  ;;  %736 = vmatpush1.bf16.msra.mxu1 %v972_v23  ;;  %v1038_v1 = vld [vmem:[%s1444_s1 + $0x204] ss:$16 sps:$4 sm:$0xff]   ;;  %v1041_v2 = vld [vmem:[%s1444_s1 + $0x20c] ss:$16 sps:$4 sm:$0xff]   ;;  %v1036_v4 = vld [vmem:[%s1444_s1 + $0x200] ss:$16 sps:$4 sm:$0xff]  }
  0x18   :  { %651 = vmatprep.subr.bf16.mxu0 %v973_v24  ;;  %737 = vmatprep.subr.bf16.mxu1 %v975_v25  ;;  %v1033_v3 = vld [vmem:[%s1445_s0] ss:$16 sps:$4 sm:$0x1f]   ;;  %v1039_v5 = vld [vmem:[%s1444_s1 + $0x208] ss:$16 sps:$4 sm:$0xff]  }
  0x19   :  { %v1044_v6 = vld [vmem:[%s1444_s1 + $0x224] ss:$16 sps:$4 sm:$0xff]   ;;  %v1047_v7 = vld [vmem:[%s1444_s1 + $0x22c] ss:$16 sps:$4 sm:$0xff]   ;;  %v1042_v8 = vld [vmem:[%s1444_s1 + $0x220] ss:$16 sps:$4 sm:$0xff]  }
  0x1a   :  { %v1045_v9 = vld [vmem:[%s1444_s1 + $0x228] ss:$16 sps:$4 sm:$0xff]   ;;  %v1090_v10 = vld [vmem:[%s1445_s0 + $0xc] ss:$16 sps:$4 sm:$0x1f]  }
  0x1b   :  { %652 = vmatpush1.bf16.msra.mxu0 %v977_v26  ;;  %738 = vmatpush1.bf16.msra.mxu1 %v978_v27  ;;  %v1050_v11 = vld [vmem:[%s1444_s1 + $0x244] ss:$16 sps:$4 sm:$0xff]   ;;  %v1053_v12 = vld [vmem:[%s1444_s1 + $0x24c] ss:$16 sps:$4 sm:$0xff]   ;;  %v1048_v13 = vld [vmem:[%s1444_s1 + $0x240] ss:$16 sps:$4 sm:$0xff]  }
  0x1c   :  { %653 = vmatprep.subr.bf16.mxu0 %v979_v28  ;;  %739 = vmatprep.subr.bf16.mxu1 %v981_v29  ;;  %v1051_v14 = vld [vmem:[%s1444_s1 + $0x248] ss:$16 sps:$4 sm:$0xff]   ;;  %v1056_v15 = vld [vmem:[%s1444_s1 + $0x264] ss:$16 sps:$4 sm:$0xff]   ;;  %v1059_v16 = vld [vmem:[%s1444_s1 + $0x26c] ss:$16 sps:$4 sm:$0xff]  }
  0x1d   :  { %v1054_v17 = vld [vmem:[%s1444_s1 + $0x260] ss:$16 sps:$4 sm:$0xff]   ;;  %v1057_v18 = vld [vmem:[%s1444_s1 + $0x268] ss:$16 sps:$4 sm:$0xff]   ;;  %v1062_v19 = vld [vmem:[%s1444_s1 + $0x284] ss:$16 sps:$4 sm:$0xff]  }
  0x1e   :  { %v1065_v20 = vld [vmem:[%s1444_s1 + $0x28c] ss:$16 sps:$4 sm:$0xff]   ;;  %v1060_v21 = vld [vmem:[%s1444_s1 + $0x280] ss:$16 sps:$4 sm:$0xff]   ;;  %v1063_v22 = vld [vmem:[%s1444_s1 + $0x288] ss:$16 sps:$4 sm:$0xff]  }
  0x1f   :  { %654 = vmatpush1.bf16.msra.mxu0 %v983_v30  ;;  %740 = vmatpush1.bf16.msra.mxu1 %v984_v31  ;;  %v1068_v23 = vld [vmem:[%s1444_s1 + $0x2a4] ss:$16 sps:$4 sm:$0xff]   ;;  %v1071_v24 = vld [vmem:[%s1444_s1 + $0x2ac] ss:$16 sps:$4 sm:$0xff]   ;;  %v1066_v25 = vld [vmem:[%s1444_s1 + $0x2a0] ss:$16 sps:$4 sm:$0xff]  }
  0x20   :  { %655 = vmatprep.subr.bf16.mxu0 %v985_v32  ;;  %741 = vmatprep.subr.bf16.mxu1 %v987_v33  ;;  %v1069_v26 = vld [vmem:[%s1444_s1 + $0x2a8] ss:$16 sps:$4 sm:$0xff]   ;;  %v1074_v27 = vld [vmem:[%s1444_s1 + $0x2c4] ss:$16 sps:$4 sm:$0xff]   ;;  %v1077_v28 = vld [vmem:[%s1444_s1 + $0x2cc] ss:$16 sps:$4 sm:$0xff]  }
  0x21   :  { %v1072_v29 = vld [vmem:[%s1444_s1 + $0x2c0] ss:$16 sps:$4 sm:$0xff]   ;;  %v1075_v30 = vld [vmem:[%s1444_s1 + $0x2c8] ss:$16 sps:$4 sm:$0xff]   ;;  %v1080_v31 = vld [vmem:[%s1444_s1 + $0x2e4] ss:$16 sps:$4 sm:$0xff]  }
  0x22   :  { %v1083_v32 = vld [vmem:[%s1444_s1 + $0x2ec] ss:$16 sps:$4 sm:$0xff]   ;;  %v1078_v33 = vld [vmem:[%s1444_s1 + $0x2e0] ss:$16 sps:$4 sm:$0xff]  }
  0x23   :  { %656 = vmatpush1.bf16.msra.mxu0 %v989_v34  ;;  %742 = vmatpush1.bf16.msra.mxu1 %v990_v35  ;;  %v1081_v34 = vld [vmem:[%s1444_s1 + $0x2e8] ss:$16 sps:$4 sm:$0xff]   ;;  %v1086_v35 = vld [vmem:[%s1444_s1 + $0x304] ss:$16 sps:$4 sm:$0xff]  }
  0x24   :  { %657 = vmatprep.subr.bf16.mxu0 %v991_v36  ;;  %743 = vmatprep.subr.bf16.mxu1 %v993_v37  ;;  %v1089_v36 = vld [vmem:[%s1444_s1 + $0x30c] ss:$16 sps:$4 sm:$0xff]   ;;  %v1084_v37 = vld [vmem:[%s1444_s1 + $0x300] ss:$16 sps:$4 sm:$0xff]  }
  0x27   :  { %658 = vmatpush1.bf16.msra.mxu0 %v995_v38  ;;  %744 = vmatpush1.bf16.msra.mxu1 %v996_v39  ;;  %v1087_v38 = vld [vmem:[%s1444_s1 + $0x308] ss:$16 sps:$4 sm:$0xff]  }
  0x28   :  { %659 = vmatprep.subr.bf16.mxu0 %v997_v40  ;;  %745 = vmatprep.subr.bf16.mxu1 %v999_v41  ;;  %v1092_v39 = vld [vmem:[%s1445_s0 + $0x8] ss:$16 sps:$4 sm:$0x1f]  }
  0x2b   :  { %660 = vmatpush1.bf16.msra.mxu0 %v1001_v42  ;;  %746 = vmatpush1.bf16.msra.mxu1 %v1002_v43 }
  0x2c   :  { %661 = vmatprep.subr.bf16.mxu0 %v1003_v44  ;;  %747 = vmatprep.subr.bf16.mxu1 %v1005_v45 }
  0x2f   :  { %662 = vmatpush1.bf16.msra.mxu0 %v1007_v46  ;;  %748 = vmatpush1.bf16.msra.mxu1 %v1008_v47 }
  0x30   :  { %663 = vmatprep.subr.bf16.mxu0 %v1009_v48  ;;  %749 = vmatprep.subr.bf16.mxu1 %v1011_v50 }
  0x33   :  { %664 = vmatpush1.bf16.msra.mxu0 %v1013_v51  ;;  %750 = vmatpush1.bf16.msra.mxu1 %v1014_v52 }
  0x34   :  { %665 = vmatprep.subr.bf16.mxu0 %v1015_v53  ;;  %751 = vmatprep.subr.bf16.mxu1 %v1017_v54 }
  0x37   :  { %666 = vmatpush1.bf16.msra.mxu0 %v1019_v55  ;;  %752 = vmatpush1.bf16.msra.mxu1 %v1020_v56 }
  0x38   :  { %667 = vmatprep.subr.bf16.mxu0 %v1021_v57  ;;  %753 = vmatprep.subr.bf16.mxu1 %v1023_v58 }
  0x3b   :  { %668 = vmatpush1.bf16.msra.mxu0 %v1025_v59  ;;  %754 = vmatpush1.bf16.msra.mxu1 %v1026_v60 }
  0x3c   :  { %669 = vmatprep.subr.bf16.mxu0 %v1027_v61  ;;  %755 = vmatprep.subr.bf16.mxu1 %v1029_v62 }
  0x3f   :  { %670 = vmatpush1.bf16.msra.mxu0 %v1031_v63  ;;  %756 = vmatpush1.bf16.msra.mxu1 %v1032_v0 }
  0x40   :  { %682 = vmatprep.subr.bf16.mxu0 %v1038_v1  ;;  %768 = vmatprep.subr.bf16.mxu1 %v1041_v2 }
  0x42   :  { %672 = vmatmul.mubr.bf16.vlgmr.msra.gmra.mrb[0].mxu0 %v1033_v3  ;;  %758 = vmatmul.mubr.bf16.vlgmr.msra.gmra.mrb[0].mxu1 %v1033_v3 }
  0x43   :  { %683 = vmatpush1.bf16.msra.mxu0 %v1036_v4  ;;  %769 = vmatpush1.bf16.msra.mxu1 %v1039_v5 }
  0x44   :  { %684 = vmatprep.subr.bf16.mxu0 %v1044_v6  ;;  %770 = vmatprep.subr.bf16.mxu1 %v1047_v7 }
  0x45   :  { %927 = vmatprep.mubr.msk.bf16.mxu0 %vm635_vm0, %v1090_v10  ;;  %928 = vmatprep.mubr.msk.bf16.mxu1 %vm635_vm0, %v1090_v10 }
  0x47   :  { %685 = vmatpush1.bf16.msra.mxu0 %v1042_v8  ;;  %771 = vmatpush1.bf16.msra.mxu1 %v1045_v9 }
  0x48   :  { %686 = vmatprep.subr.bf16.mxu0 %v1050_v11  ;;  %772 = vmatprep.subr.bf16.mxu1 %v1053_v12 }
  0x4b   :  { %687 = vmatpush1.bf16.msra.mxu0 %v1048_v13  ;;  %773 = vmatpush1.bf16.msra.mxu1 %v1051_v14 }
  0x4c   :  { %688 = vmatprep.subr.bf16.mxu0 %v1056_v15  ;;  %774 = vmatprep.subr.bf16.mxu1 %v1059_v16 }
  0x4f   :  { %689 = vmatpush1.bf16.msra.mxu0 %v1054_v17  ;;  %775 = vmatpush1.bf16.msra.mxu1 %v1057_v18 }
  0x50   :  { %690 = vmatprep.subr.bf16.mxu0 %v1062_v19  ;;  %776 = vmatprep.subr.bf16.mxu1 %v1065_v20 }
  0x53   :  { %691 = vmatpush1.bf16.msra.mxu0 %v1060_v21  ;;  %777 = vmatpush1.bf16.msra.mxu1 %v1063_v22 }
  0x54   :  { %692 = vmatprep.subr.bf16.mxu0 %v1068_v23  ;;  %778 = vmatprep.subr.bf16.mxu1 %v1071_v24 }
  0x57   :  { %693 = vmatpush1.bf16.msra.mxu0 %v1066_v25  ;;  %779 = vmatpush1.bf16.msra.mxu1 %v1069_v26 }
  0x58   :  { %694 = vmatprep.subr.bf16.mxu0 %v1074_v27  ;;  %780 = vmatprep.subr.bf16.mxu1 %v1077_v28 }
  0x5b   :  { %695 = vmatpush1.bf16.msra.mxu0 %v1072_v29  ;;  %781 = vmatpush1.bf16.msra.mxu1 %v1075_v30 }
  0x5c   :  { %696 = vmatprep.subr.bf16.mxu0 %v1080_v31  ;;  %782 = vmatprep.subr.bf16.mxu1 %v1083_v32 }
  0x5f   :  { %697 = vmatpush1.bf16.msra.mxu0 %v1078_v33  ;;  %783 = vmatpush1.bf16.msra.mxu1 %v1081_v34 }
  0x60   :  { %698 = vmatprep.subr.bf16.mxu0 %v1086_v35  ;;  %784 = vmatprep.subr.bf16.mxu1 %v1089_v36 }
  0x63   :  { %699 = vmatpush1.bf16.msra.mxu0 %v1084_v37  ;;  %785 = vmatpush1.bf16.msra.mxu1 %v1087_v38 }
  0x66   :  { %715 = vmatmul.mubr.bf16.vlgmr.msra.gmra.mrb[0].mxu0 %v1092_v39  ;;  %801 = vmatmul.mubr.bf16.vlgmr.msra.gmra.mrb[0].mxu1 %v1092_v39 }
 0x139   :  { %v716_v40 = vpop.f32.mrb[0].mxu0  ;;  %v802_v41 = vpop.f32.mrb[0].mxu1 }
 0x13a   :  { %811 = vst [vmem:[%s1446_s2] sm:$0xff] %v716_v40  ;;  %813 = vst [vmem:[%s1446_s2 + $0x10] sm:$0xff] %v802_v41  ;;  %v718_v42 = vpop.f32.mrb[1].mxu0  ;;  %v804_v43 = vpop.f32.mrb[1].mxu1 }
 0x13b   :  { %812 = vst [vmem:[%s1446_s2 + $0x8] sm:$0xff] %v718_v42  ;;  %814 = vst [vmem:[%s1446_s2 + $0x18] sm:$0xff] %v804_v43  ;;  %v720_v44 = vpop.f32.mrb[2].mxu0  ;;  %v806_v45 = vpop.f32.mrb[2].mxu1 }
 0x13c   :  { %815 = vst [vmem:[%s1446_s2 + $0x20] sm:$0x1] %v720_v44  ;;  %817 = vst [vmem:[%s1446_s2 + $0x30] sm:$0x1] %v806_v45  ;;  %v722_v46 = vpop.f32.mrb[3].mxu0  ;;  %v808_v47 = vpop.f32.mrb[3].mxu1 }
 0x13d   :  { %816 = vst [vmem:[%s1446_s2 + $0x28] sm:$0x1] %v722_v46  ;;  %818 = vst [vmem:[%s1446_s2 + $0x38] sm:$0x1] %v808_v47 }

// kernel: _lambda_.49
= control target key start
LH: loop header
LB: loop body
LE: loop exit
PB: predicated region body
PF: predicated region fallthrough
CT: control target
= control target key end

     0   :  { %v1109_v38 = vmov 1966171168   ;;  %v125_v40 = vlaneseq  ;;  %vm641_vm0 = vcmask 130048   ;;  %s1446_s1 = inlined_call_operand.vmem [shape: bf16[400,512], index: 1, kind: input, shape index: {}]   ;;  %s1447_s0 = inlined_call_operand.vmem [shape: bf16[1,400], index: 0, kind: input, shape index: {}]   ;;  %s1448_s2 = inlined_call_operand.vmem [shape: f32[1,512], index: 2, kind: output, shape index: {}]  }
   0x1   :  { %v959_v0 = vld [vmem:[%s1446_s1 + $0x4] ss:$16 sps:$4 sm:$0xff]   ;;  %v961_v1 = vld [vmem:[%s1446_s1 + $0xc] ss:$16 sps:$4 sm:$0xff]   ;;  %v963_v2 = vld [vmem:[%s1446_s1] ss:$16 sps:$4 sm:$0xff]   ;;  %v123_v39 = vunpack.c.l.s4 %v1109_v38 }
   0x2   :  { %645 = vmatprep.subr.bf16.mxu0 %v959_v0  ;;  %v964_v3 = vld [vmem:[%s1446_s1 + $0x8] ss:$16 sps:$4 sm:$0xff]   ;;  %727 = vmatprep.subr.bf16.mxu1 %v961_v1  ;;  %v965_v4 = vld [vmem:[%s1446_s1 + $0x24] ss:$16 sps:$4 sm:$0xff]   ;;  %v967_v5 = vld [vmem:[%s1446_s1 + $0x2c] ss:$16 sps:$4 sm:$0xff]  }
   0x3   :  { %646 = vmatpush1.bf16.msra.mxu0 %v963_v2  ;;  %728 = vmatpush1.bf16.msra.mxu1 %v964_v3  ;;  %v969_v6 = vld [vmem:[%s1446_s1 + $0x20] ss:$16 sps:$4 sm:$0xff]   ;;  %v970_v7 = vld [vmem:[%s1446_s1 + $0x28] ss:$16 sps:$4 sm:$0xff]   ;;  %v971_v8 = vld [vmem:[%s1446_s1 + $0x44] ss:$16 sps:$4 sm:$0xff]   ;;  %v124_v45 = vunpack.c.0.s8 %v123_v39 }
   0x4   :  { %647 = vmatprep.subr.bf16.mxu0 %v965_v4  ;;  %729 = vmatprep.subr.bf16.mxu1 %v967_v5  ;;  %v973_v9 = vld [vmem:[%s1446_s1 + $0x4c] ss:$16 sps:$4 sm:$0xff]   ;;  %v975_v10 = vld [vmem:[%s1446_s1 + $0x40] ss:$16 sps:$4 sm:$0xff]   ;;  %v976_v11 = vld [vmem:[%s1446_s1 + $0x48] ss:$16 sps:$4 sm:$0xff]  }
   0x5   :  { %v977_v12 = vld [vmem:[%s1446_s1 + $0x64] ss:$16 sps:$4 sm:$0xff]   ;;  %v979_v13 = vld [vmem:[%s1446_s1 + $0x6c] ss:$16 sps:$4 sm:$0xff]   ;;  %v981_v14 = vld [vmem:[%s1446_s1 + $0x60] ss:$16 sps:$4 sm:$0xff]  }
   0x6   :  { %v982_v15 = vld [vmem:[%s1446_s1 + $0x68] ss:$16 sps:$4 sm:$0xff]   ;;  %v983_v16 = vld [vmem:[%s1446_s1 + $0x84] ss:$16 sps:$4 sm:$0xff]   ;;  %v985_v17 = vld [vmem:[%s1446_s1 + $0x8c] ss:$16 sps:$4 sm:$0xff]  }
   0x7   :  { %648 = vmatpush1.bf16.msra.mxu0 %v969_v6  ;;  %730 = vmatpush1.bf16.msra.mxu1 %v970_v7  ;;  %v987_v18 = vld [vmem:[%s1446_s1 + $0x80] ss:$16 sps:$4 sm:$0xff]   ;;  %v988_v19 = vld [vmem:[%s1446_s1 + $0x88] ss:$16 sps:$4 sm:$0xff]   ;;  %v989_v20 = vld [vmem:[%s1446_s1 + $0xa4] ss:$16 sps:$4 sm:$0xff]  }
   0x8   :  { %649 = vmatprep.subr.bf16.mxu0 %v971_v8  ;;  %731 = vmatprep.subr.bf16.mxu1 %v973_v9  ;;  %v991_v21 = vld [vmem:[%s1446_s1 + $0xac] ss:$16 sps:$4 sm:$0xff]   ;;  %v993_v22 = vld [vmem:[%s1446_s1 + $0xa0] ss:$16 sps:$4 sm:$0xff]   ;;  %v994_v23 = vld [vmem:[%s1446_s1 + $0xa8] ss:$16 sps:$4 sm:$0xff]  }
   0x9   :  { %v995_v24 = vld [vmem:[%s1446_s1 + $0xc4] ss:$16 sps:$4 sm:$0xff]   ;;  %v997_v25 = vld [vmem:[%s1446_s1 + $0xcc] ss:$16 sps:$4 sm:$0xff]   ;;  %v999_v26 = vld [vmem:[%s1446_s1 + $0xc0] ss:$16 sps:$4 sm:$0xff]  }
   0xa   :  { %v1000_v27 = vld [vmem:[%s1446_s1 + $0xc8] ss:$16 sps:$4 sm:$0xff]   ;;  %v1001_v28 = vld [vmem:[%s1446_s1 + $0xe4] ss:$16 sps:$4 sm:$0xff]   ;;  %v1003_v29 = vld [vmem:[%s1446_s1 + $0xec] ss:$16 sps:$4 sm:$0xff]  }
   0xb   :  { %650 = vmatpush1.bf16.msra.mxu0 %v975_v10  ;;  %732 = vmatpush1.bf16.msra.mxu1 %v976_v11  ;;  %v1005_v30 = vld [vmem:[%s1446_s1 + $0xe0] ss:$16 sps:$4 sm:$0xff]   ;;  %v1006_v31 = vld [vmem:[%s1446_s1 + $0xe8] ss:$16 sps:$4 sm:$0xff]   ;;  %v1007_v32 = vld [vmem:[%s1446_s1 + $0x104] ss:$16 sps:$4 sm:$0xff]  }
   0xc   :  { %651 = vmatprep.subr.bf16.mxu0 %v977_v12  ;;  %733 = vmatprep.subr.bf16.mxu1 %v979_v13  ;;  %v1009_v33 = vld [vmem:[%s1446_s1 + $0x10c] ss:$16 sps:$4 sm:$0xff]   ;;  %v1011_v34 = vld [vmem:[%s1446_s1 + $0x100] ss:$16 sps:$4 sm:$0xff]   ;;  %v1012_v35 = vld [vmem:[%s1446_s1 + $0x108] ss:$16 sps:$4 sm:$0xff]  }
   0xd   :  { %v1013_v36 = vld [vmem:[%s1446_s1 + $0x124] ss:$16 sps:$4 sm:$0xff]   ;;  %v1015_v37 = vld [vmem:[%s1446_s1 + $0x12c] ss:$16 sps:$4 sm:$0xff]   ;;  %v1017_v41 = vld [vmem:[%s1446_s1 + $0x120] ss:$16 sps:$4 sm:$0xff]  }
   0xe   :  { %v1018_v42 = vld [vmem:[%s1446_s1 + $0x128] ss:$16 sps:$4 sm:$0xff]   ;;  %v1019_v43 = vld [vmem:[%s1446_s1 + $0x144] ss:$16 sps:$4 sm:$0xff]   ;;  %v1021_v44 = vld [vmem:[%s1446_s1 + $0x14c] ss:$16 sps:$4 sm:$0xff]  }
   0xf   :  { %652 = vmatpush1.bf16.msra.mxu0 %v981_v14  ;;  %734 = vmatpush1.bf16.msra.mxu1 %v982_v15  ;;  %v126_v46 = vshrl.u32 %v125_v40, 7  ;;  %v1023_v47 = vld [vmem:[%s1446_s1 + $0x140] ss:$16 sps:$4 sm:$0xff]   ;;  %v1024_v48 = vld [vmem:[%s1446_s1 + $0x148] ss:$16 sps:$4 sm:$0xff]   ;;  %vm840_vm1 = vcmp.lt.s32.totalorder %v125_v40, 512 }
  0x10   :  { %653 = vmatprep.subr.bf16.mxu0 %v983_v16  ;;  %735 = vmatprep.subr.bf16.mxu1 %v985_v17  ;;  %v1025_v49 = vld [vmem:[%s1446_s1 + $0x164] ss:$16 sps:$4 sm:$0xff]   ;;  %v1027_v50 = vld [vmem:[%s1446_s1 + $0x16c] ss:$16 sps:$4 sm:$0xff]   ;;  %v1029_v53 = vld [vmem:[%s1446_s1 + $0x160] ss:$16 sps:$4 sm:$0xff]  }
  0x11   :  { %v1264_v51 = vsub.s32 %v124_v45, %v126_v46  ;;  %v847_v52 = vld.sshfl [vmem:[%s1447_s0] sm:$0x33 pattern:$0x75316420]  ;;  %v1030_v54 = vld [vmem:[%s1446_s1 + $0x168] ss:$16 sps:$4 sm:$0xff]  }
  0x12   :  { %v121_v55 = vcombine.high %v847_v52, %v847_v52  ;;  %v1031_v56 = vld [vmem:[%s1446_s1 + $0x184] ss:$16 sps:$4 sm:$0xff]   ;;  %v1033_v57 = vld [vmem:[%s1446_s1 + $0x18c] ss:$16 sps:$4 sm:$0xff]   ;;  %v1035_v59 = vld [vmem:[%s1446_s1 + $0x180] ss:$16 sps:$4 sm:$0xff]  }
  0x13   :  { %654 = vmatpush1.bf16.msra.mxu0 %v987_v18  ;;  %736 = vmatpush1.bf16.msra.mxu1 %v988_v19  ;;  %v1036_v60 = vld [vmem:[%s1446_s1 + $0x188] ss:$16 sps:$4 sm:$0xff]   ;;  %v1037_v61 = vld [vmem:[%s1446_s1 + $0x1a4] ss:$16 sps:$4 sm:$0xff]   ;;  %v1039_v62 = vld [vmem:[%s1446_s1 + $0x1ac] ss:$16 sps:$4 sm:$0xff]   ;;  %v1334_v12 = vrot.slane %v847_v52, %v1264_v51 }
  0x14   :  { %655 = vmatprep.subr.bf16.mxu0 %v989_v20  ;;  %737 = vmatprep.subr.bf16.mxu1 %v991_v21  ;;  %v135_v58 = vrot.slane %v121_v55, %v1264_v51  ;;  %v1041_v63 = vld [vmem:[%s1446_s1 + $0x1a0] ss:$16 sps:$4 sm:$0xff]   ;;  %v1042_v0 = vld [vmem:[%s1446_s1 + $0x1a8] ss:$16 sps:$4 sm:$0xff]   ;;  %v1043_v1 = vld [vmem:[%s1446_s1 + $0x1c4] ss:$16 sps:$4 sm:$0xff]  }
  0x15   :  { %v1045_v2 = vld [vmem:[%s1446_s1 + $0x1cc] ss:$16 sps:$4 sm:$0xff]   ;;  %v1047_v3 = vld [vmem:[%s1446_s1 + $0x1c0] ss:$16 sps:$4 sm:$0xff]   ;;  %v1048_v4 = vld [vmem:[%s1446_s1 + $0x1c8] ss:$16 sps:$4 sm:$0xff]  }
  0x16   :  { %677 = vmatprep.mubr.bf16.mxu0 %v135_v58  ;;  %759 = vmatprep.mubr.bf16.mxu1 %v135_v58  ;;  %v1049_v5 = vld [vmem:[%s1446_s1 + $0x1e4] ss:$16 sps:$4 sm:$0xff]   ;;  %v1051_v6 = vld [vmem:[%s1446_s1 + $0x1ec] ss:$16 sps:$4 sm:$0xff]   ;;  %v1053_v7 = vld [vmem:[%s1446_s1 + $0x1e0] ss:$16 sps:$4 sm:$0xff]   ;;  %v137_v16 = vcombine.high %v135_v58, %v135_v58 }
  0x17   :  { %656 = vmatpush1.bf16.msra.mxu0 %v993_v22  ;;  %738 = vmatpush1.bf16.msra.mxu1 %v994_v23  ;;  %v1054_v8 = vld [vmem:[%s1446_s1 + $0x1e8] ss:$16 sps:$4 sm:$0xff]   ;;  %v1057_v9 = vld [vmem:[%s1446_s1 + $0x204] ss:$16 sps:$4 sm:$0xff]   ;;  %v1060_v10 = vld [vmem:[%s1446_s1 + $0x20c] ss:$16 sps:$4 sm:$0xff]  }
  0x18   :  { %657 = vmatprep.subr.bf16.mxu0 %v995_v24  ;;  %739 = vmatprep.subr.bf16.mxu1 %v997_v25  ;;  %v1055_v11 = vld [vmem:[%s1446_s1 + $0x200] ss:$16 sps:$4 sm:$0xff]   ;;  %v1058_v13 = vld [vmem:[%s1446_s1 + $0x208] ss:$16 sps:$4 sm:$0xff]   ;;  %v1063_v14 = vld [vmem:[%s1446_s1 + $0x224] ss:$16 sps:$4 sm:$0xff]  }
  0x19   :  { %v1066_v15 = vld [vmem:[%s1446_s1 + $0x22c] ss:$16 sps:$4 sm:$0xff]   ;;  %v1061_v17 = vld [vmem:[%s1446_s1 + $0x220] ss:$16 sps:$4 sm:$0xff]   ;;  %v1064_v18 = vld [vmem:[%s1446_s1 + $0x228] ss:$16 sps:$4 sm:$0xff]  }
  0x1a   :  { %v1069_v19 = vld [vmem:[%s1446_s1 + $0x244] ss:$16 sps:$4 sm:$0xff]   ;;  %v1072_v20 = vld [vmem:[%s1446_s1 + $0x24c] ss:$16 sps:$4 sm:$0xff]   ;;  %v1067_v21 = vld [vmem:[%s1446_s1 + $0x240] ss:$16 sps:$4 sm:$0xff]  }
  0x1b   :  { %658 = vmatpush1.bf16.msra.mxu0 %v999_v26  ;;  %740 = vmatpush1.bf16.msra.mxu1 %v1000_v27  ;;  %v1070_v22 = vld [vmem:[%s1446_s1 + $0x248] ss:$16 sps:$4 sm:$0xff]   ;;  %v1075_v23 = vld [vmem:[%s1446_s1 + $0x264] ss:$16 sps:$4 sm:$0xff]   ;;  %v1078_v24 = vld [vmem:[%s1446_s1 + $0x26c] ss:$16 sps:$4 sm:$0xff]  }
  0x1c   :  { %659 = vmatprep.subr.bf16.mxu0 %v1001_v28  ;;  %741 = vmatprep.subr.bf16.mxu1 %v1003_v29  ;;  %v1073_v25 = vld [vmem:[%s1446_s1 + $0x260] ss:$16 sps:$4 sm:$0xff]   ;;  %v1076_v26 = vld [vmem:[%s1446_s1 + $0x268] ss:$16 sps:$4 sm:$0xff]   ;;  %v1081_v27 = vld [vmem:[%s1446_s1 + $0x284] ss:$16 sps:$4 sm:$0xff]  }
  0x1d   :  { %v1084_v28 = vld [vmem:[%s1446_s1 + $0x28c] ss:$16 sps:$4 sm:$0xff]   ;;  %v1079_v29 = vld [vmem:[%s1446_s1 + $0x280] ss:$16 sps:$4 sm:$0xff]   ;;  %v1094_v38 = vld [vmem:[%s1446_s1 + $0x2c8] ss:$16 sps:$4 sm:$0xff]  }
  0x1e   :  { %v1099_v39 = vld [vmem:[%s1446_s1 + $0x2e4] ss:$16 sps:$4 sm:$0xff]   ;;  %v1108_v45 = vld [vmem:[%s1446_s1 + $0x30c] ss:$16 sps:$4 sm:$0xff]   ;;  %v1103_v46 = vld [vmem:[%s1446_s1 + $0x300] ss:$16 sps:$4 sm:$0xff]  }
  0x1f   :  { %660 = vmatpush1.bf16.msra.mxu0 %v1005_v30  ;;  %742 = vmatpush1.bf16.msra.mxu1 %v1006_v31  ;;  %v1082_v30 = vld [vmem:[%s1446_s1 + $0x288] ss:$16 sps:$4 sm:$0xff]   ;;  %v1087_v31 = vld [vmem:[%s1446_s1 + $0x2a4] ss:$16 sps:$4 sm:$0xff]  }
  0x20   :  { %661 = vmatprep.subr.bf16.mxu0 %v1007_v32  ;;  %743 = vmatprep.subr.bf16.mxu1 %v1009_v33  ;;  %v1090_v32 = vld [vmem:[%s1446_s1 + $0x2ac] ss:$16 sps:$4 sm:$0xff]   ;;  %v1085_v33 = vld [vmem:[%s1446_s1 + $0x2a0] ss:$16 sps:$4 sm:$0xff]  }
  0x23   :  { %662 = vmatpush1.bf16.msra.mxu0 %v1011_v34  ;;  %744 = vmatpush1.bf16.msra.mxu1 %v1012_v35  ;;  %v1088_v34 = vld [vmem:[%s1446_s1 + $0x2a8] ss:$16 sps:$4 sm:$0xff]   ;;  %v1093_v35 = vld [vmem:[%s1446_s1 + $0x2c4] ss:$16 sps:$4 sm:$0xff]  }
  0x24   :  { %663 = vmatprep.subr.bf16.mxu0 %v1013_v36  ;;  %745 = vmatprep.subr.bf16.mxu1 %v1015_v37  ;;  %v1096_v36 = vld [vmem:[%s1446_s1 + $0x2cc] ss:$16 sps:$4 sm:$0xff]   ;;  %v1091_v37 = vld [vmem:[%s1446_s1 + $0x2c0] ss:$16 sps:$4 sm:$0xff]  }
  0x27   :  { %664 = vmatpush1.bf16.msra.mxu0 %v1017_v41  ;;  %746 = vmatpush1.bf16.msra.mxu1 %v1018_v42  ;;  %v1102_v41 = vld [vmem:[%s1446_s1 + $0x2ec] ss:$16 sps:$4 sm:$0xff]   ;;  %v1097_v42 = vld [vmem:[%s1446_s1 + $0x2e0] ss:$16 sps:$4 sm:$0xff]  }
  0x28   :  { %665 = vmatprep.subr.bf16.mxu0 %v1019_v43  ;;  %747 = vmatprep.subr.bf16.mxu1 %v1021_v44  ;;  %v1100_v43 = vld [vmem:[%s1446_s1 + $0x2e8] ss:$16 sps:$4 sm:$0xff]   ;;  %v1105_v44 = vld [vmem:[%s1446_s1 + $0x304] ss:$16 sps:$4 sm:$0xff]  }
  0x2b   :  { %666 = vmatpush1.bf16.msra.mxu0 %v1023_v47  ;;  %748 = vmatpush1.bf16.msra.mxu1 %v1024_v48  ;;  %v1106_v47 = vld [vmem:[%s1446_s1 + $0x308] ss:$16 sps:$4 sm:$0xff]   ;;  %v136_v48 = vcombine.high %v1334_v12, %v1334_v12 }
  0x2c   :  { %667 = vmatprep.subr.bf16.mxu0 %v1025_v49  ;;  %749 = vmatprep.subr.bf16.mxu1 %v1027_v50 }
  0x2f   :  { %668 = vmatpush1.bf16.msra.mxu0 %v1029_v53  ;;  %750 = vmatpush1.bf16.msra.mxu1 %v1030_v54 }
  0x30   :  { %669 = vmatprep.subr.bf16.mxu0 %v1031_v56  ;;  %751 = vmatprep.subr.bf16.mxu1 %v1033_v57 }
  0x33   :  { %670 = vmatpush1.bf16.msra.mxu0 %v1035_v59  ;;  %752 = vmatpush1.bf16.msra.mxu1 %v1036_v60 }
  0x34   :  { %671 = vmatprep.subr.bf16.mxu0 %v1037_v61  ;;  %753 = vmatprep.subr.bf16.mxu1 %v1039_v62 }
  0x37   :  { %672 = vmatpush1.bf16.msra.mxu0 %v1041_v63  ;;  %754 = vmatpush1.bf16.msra.mxu1 %v1042_v0 }
  0x38   :  { %673 = vmatprep.subr.bf16.mxu0 %v1043_v1  ;;  %755 = vmatprep.subr.bf16.mxu1 %v1045_v2 }
  0x3b   :  { %674 = vmatpush1.bf16.msra.mxu0 %v1047_v3  ;;  %756 = vmatpush1.bf16.msra.mxu1 %v1048_v4 }
  0x3c   :  { %675 = vmatprep.subr.bf16.mxu0 %v1049_v5  ;;  %757 = vmatprep.subr.bf16.mxu1 %v1051_v6 }
  0x3f   :  { %676 = vmatpush1.bf16.msra.mxu0 %v1053_v7  ;;  %758 = vmatpush1.bf16.msra.mxu1 %v1054_v8 }
  0x40   :  { %686 = vmatprep.subr.bf16.mxu0 %v1057_v9  ;;  %768 = vmatprep.subr.bf16.mxu1 %v1060_v10 }
  0x42   :  { %678 = vmatmul.mubr.bf16.vlgmr.msra.gmra.mrb[0].mxu0 %v1334_v12  ;;  %760 = vmatmul.mubr.bf16.vlgmr.msra.gmra.mrb[0].mxu1 %v1334_v12 }
  0x43   :  { %687 = vmatpush1.bf16.msra.mxu0 %v1055_v11  ;;  %769 = vmatpush1.bf16.msra.mxu1 %v1058_v13 }
  0x44   :  { %688 = vmatprep.subr.bf16.mxu0 %v1063_v14  ;;  %770 = vmatprep.subr.bf16.mxu1 %v1066_v15 }
  0x45   :  { %948 = vmatprep.mubr.msk.bf16.mxu0 %vm641_vm0, %v137_v16  ;;  %949 = vmatprep.mubr.msk.bf16.mxu1 %vm641_vm0, %v137_v16 }
  0x47   :  { %689 = vmatpush1.bf16.msra.mxu0 %v1061_v17  ;;  %771 = vmatpush1.bf16.msra.mxu1 %v1064_v18 }
  0x48   :  { %690 = vmatprep.subr.bf16.mxu0 %v1069_v19  ;;  %772 = vmatprep.subr.bf16.mxu1 %v1072_v20 }
  0x4b   :  { %691 = vmatpush1.bf16.msra.mxu0 %v1067_v21  ;;  %773 = vmatpush1.bf16.msra.mxu1 %v1070_v22 }
  0x4c   :  { %692 = vmatprep.subr.bf16.mxu0 %v1075_v23  ;;  %774 = vmatprep.subr.bf16.mxu1 %v1078_v24 }
  0x4f   :  { %693 = vmatpush1.bf16.msra.mxu0 %v1073_v25  ;;  %775 = vmatpush1.bf16.msra.mxu1 %v1076_v26 }
  0x50   :  { %694 = vmatprep.subr.bf16.mxu0 %v1081_v27  ;;  %776 = vmatprep.subr.bf16.mxu1 %v1084_v28 }
  0x53   :  { %695 = vmatpush1.bf16.msra.mxu0 %v1079_v29  ;;  %777 = vmatpush1.bf16.msra.mxu1 %v1082_v30 }
  0x54   :  { %696 = vmatprep.subr.bf16.mxu0 %v1087_v31  ;;  %778 = vmatprep.subr.bf16.mxu1 %v1090_v32 }
  0x57   :  { %697 = vmatpush1.bf16.msra.mxu0 %v1085_v33  ;;  %779 = vmatpush1.bf16.msra.mxu1 %v1088_v34 }
  0x58   :  { %698 = vmatprep.subr.bf16.mxu0 %v1093_v35  ;;  %780 = vmatprep.subr.bf16.mxu1 %v1096_v36 }
  0x5b   :  { %699 = vmatpush1.bf16.msra.mxu0 %v1091_v37  ;;  %781 = vmatpush1.bf16.msra.mxu1 %v1094_v38 }
  0x5c   :  { %700 = vmatprep.subr.bf16.mxu0 %v1099_v39  ;;  %782 = vmatprep.subr.bf16.mxu1 %v1102_v41 }
  0x5f   :  { %701 = vmatpush1.bf16.msra.mxu0 %v1097_v42  ;;  %783 = vmatpush1.bf16.msra.mxu1 %v1100_v43 }
  0x60   :  { %702 = vmatprep.subr.bf16.mxu0 %v1105_v44  ;;  %784 = vmatprep.subr.bf16.mxu1 %v1108_v45 }
  0x63   :  { %703 = vmatpush1.bf16.msra.mxu0 %v1103_v46  ;;  %785 = vmatpush1.bf16.msra.mxu1 %v1106_v47 }
  0x66   :  { %719 = vmatmul.mubr.bf16.vlgmr.msra.gmra.mrb[0].mxu0 %v136_v48  ;;  %801 = vmatmul.mubr.bf16.vlgmr.msra.gmra.mrb[0].mxu1 %v136_v48 }
 0x139   :  { %v720_v49 = vpop.f32.mrb[0].mxu0  ;;  %v802_v50 = vpop.f32.mrb[0].mxu1 }
 0x13a   :  { %v722_v52 = vpop.f32.mrb[1].mxu0  ;;  %v804_v53 = vpop.f32.mrb[1].mxu1 }
 0x13b   :  { %v813_v54 = vcombine.low %v720_v49, %v722_v52  ;;  %v814_v55 = vcombine.low %v802_v50, %v804_v53  ;;  %v724_v56 = vpop.f32.mrb[2].mxu0  ;;  %v806_v57 = vpop.f32.mrb[2].mxu1 }
 0x13c   :  { %v725_v58 = vpop.f32.mrb[3].mxu0  ;;  %v807_v59 = vpop.f32.mrb[3].mxu1 }
 0x13d   :  { %v821_v60 = vrot.slane %v813_v54, %v1264_v51  ;;  %v828_v61 = vrot.slane %v814_v55, %v1264_v51 }
 0x13f   :  { %v829_v62 = vcombine.low %v821_v60, %v828_v61 }
 0x141   :  { %v836_v63 = vrot.slane %v829_v62, %v1264_v51 }
 0x143   :  { %842 = vst.msk [vmem:[%s1448_s2] sm:$0xf] %vm840_vm1, %v836_v63 }

</bundles_post_ra>
